<compile_context>
chip_gen: v7x
topology: tpu7x:2x2x1
jax: 0.10.0
libtpu: 0.0.40
codegen_flags: <defaults>
</compile_context>

<pallas_src>
import numpy as np
import jax
import jax.numpy as jnp
from jax import lax
from jax.experimental import pallas as pl
from jax.experimental.pallas import tpu as pltpu

LRELU_SLOPE = 0.2
ACT_GAIN = float(np.sqrt(2.0))


def _spade_out_kernel(x_ref, w1_ref, b1_ref, w2_ref, b2_ref, out_ref, xpad_ref):
    """One batch element per grid step.

    x_ref   : (1, H, W, Cin)   bf16 NHWC input tile (unpadded)
    w1_ref  : (9*Cin, nhid)    bf16, equalized-LR scale pre-folded
    b1_ref  : (1, nhid)        f32
    w2_ref  : (nhid, 2*nf)     bf16, sqrt(2)/sqrt(nhid) pre-folded
    b2_ref  : (1, 2*nf)        f32, "+1" on the gamma half pre-folded
    out_ref : (1, H, W, 2*nf)  f32 fused [gamma | beta]
    xpad_ref: (H+2, W+2, Cin)  bf16 VMEM scratch used for in-kernel "same" padding
    """
    H, W, cin = x_ref.shape[1], x_ref.shape[2], x_ref.shape[3]
    nf2 = out_ref.shape[3]

    # In-kernel "same" padding: zero the halo'd scratch, copy the tile into its interior.
    # (Zero every step so it stays correct if grid steps land on different cores.)
    xpad_ref[...] = jnp.zeros_like(xpad_ref)
    xpad_ref[pl.ds(1, H), pl.ds(1, W), :] = x_ref[0]
    xp = xpad_ref[...]                                    # (H+2, W+2, Cin)

    # im2col: one (H*W, 9*Cin) patch matrix -> a single MXU matmul (K = 9*Cin).
    taps = [xp[dy:dy + H, dx:dx + W, :] for dy in range(3) for dx in range(3)]
    patches = jnp.concatenate(taps, axis=-1).reshape(H * W, 9 * cin)

    acc = jnp.dot(patches, w1_ref[...], preferred_element_type=jnp.float32)
    acc = acc + b1_ref[0]                                 # (H*W, nhid) f32
    # lrelu(0.2); the sqrt(2) activation gain is folded into w2.
    actv = jnp.where(acc > 0, acc, LRELU_SLOPE * acc)

    # 1x1 conv (linear) == plain matmul over channels; +1 on gamma is folded into b2.
    out = jnp.dot(actv.astype(w2_ref.dtype), w2_ref[...],
                  preferred_element_type=jnp.float32)
    out = out + b2_ref[0]                                 # (H*W, 2*nf)
    out_ref[0] = out.reshape(H, W, nf2)


def spade_out(semantic_mask_nchw, w1, b1, w2, b2):
    """semantic_mask_nchw: (N, Cin, H, W).  w1: (3,3,Cin,nhid), b1: (nhid,),
    w2: (nhid, 2*nf), b2: (2*nf,).  Returns (gamma, beta), each (N, nf, H, W)."""
    N, Cin, H, W = semantic_mask_nchw.shape
    nhid = w1.shape[-1]
    nf2 = w2.shape[-1]
    nf = nf2 // 2

    # NCHW -> NHWC (channels on the lane axis), bf16 MXU input.
    # TODO(synk): accept/return NHWC end-to-end if the surrounding model allows it,
    #             to drop these two HBM transpose passes.
    x = jnp.transpose(semantic_mask_nchw, (0, 2, 3, 1)).astype(jnp.bfloat16)

    # Fold all scalar constants into the (tiny) weights/biases once.
    w1_f = (w1.astype(jnp.float32).reshape(9 * Cin, nhid)
            * (1.0 / np.sqrt(9 * Cin))).astype(jnp.bfloat16)
    b1_f = b1.astype(jnp.float32).reshape(1, nhid)
    w2_f = (w2.astype(jnp.float32) * (ACT_GAIN / np.sqrt(nhid))).astype(jnp.bfloat16)
    b2_f = (b2.astype(jnp.float32)
            + jnp.concatenate([jnp.ones((nf,), jnp.float32),
                               jnp.zeros((nf,), jnp.float32)])).reshape(1, nf2)

    # TODO(synk): for production resolutions (e.g. 256x256, nf=64) add a halo-tiled
    #             spatial grid axis and raise vmem_limit_bytes so per-step blocks fit
    #             v7x's 64 MiB VMEM and its second TensorCore is used when N == 1.
    out = pl.pallas_call(
        _spade_out_kernel,
        out_shape=jax.ShapeDtypeStruct((N, H, W, nf2), jnp.float32),
        grid_spec=pltpu.PrefetchScalarGridSpec(
            num_scalar_prefetch=0,
            grid=(N,),
            in_specs=[
                pl.BlockSpec((1, H, W, Cin), lambda n: (n, 0, 0, 0)),
                pl.BlockSpec((9 * Cin, nhid), lambda n: (0, 0)),
                pl.BlockSpec((1, nhid), lambda n: (0, 0)),
                pl.BlockSpec((nhid, nf2), lambda n: (0, 0)),
                pl.BlockSpec((1, nf2), lambda n: (0, 0)),
            ],
            out_specs=pl.BlockSpec((1, H, W, nf2), lambda n: (n, 0, 0, 0)),
            scratch_shapes=[pltpu.VMEM((H + 2, W + 2, Cin), jnp.bfloat16)],
        ),
        compiler_params=pltpu.CompilerParams(dimension_semantics=("parallel",)),
    )(x, w1_f, b1_f, w2_f, b2_f)

    # Fused [gamma | beta] back to PyTorch's NCHW / torch.chunk(dim=1) convention.
    out_nchw = jnp.transpose(out, (0, 3, 1, 2))           # (N, 2*nf, H, W)
    return out_nchw[:, :nf], out_nchw[:, nf:]


def _reference(semantic_mask_nchw, w1, b1, w2, b2):
    """Pure-JAX f32 reference with the same semantics (NCHW, like the PyTorch module)."""
    Cin = semantic_mask_nchw.shape[1]
    nhid = w1.shape[-1]
    nf = w2.shape[-1] // 2
    x = semantic_mask_nchw.astype(jnp.float32)

    w1_oihw = jnp.transpose(w1, (3, 2, 0, 1)) * (1.0 / np.sqrt(Cin * 9))
    y = lax.conv_general_dilated(x, w1_oihw, (1, 1), "SAME",
                                 dimension_numbers=("NCHW", "OIHW", "NCHW"))
    y = y + b1[None, :, None, None]
    y = jnp.where(y > 0, y, LRELU_SLOPE * y) * ACT_GAIN

    z = jnp.einsum("nchw,co->nohw", y, w2 * (1.0 / np.sqrt(nhid)))
    z = z + b2[None, :, None, None]
    return z[:, :nf] + 1.0, z[:, nf:]


if __name__ == "__main__":
    # Small shapes consistent with the module's forward.
    N, semantic_nc, H, W = 2, 4, 16, 16
    nhidden, num_features = 32, 4

    key = jax.random.PRNGKey(0)
    k_x, k_w1, k_b1, k_w2, k_b2 = jax.random.split(key, 5)

    semantic_mask = jax.random.normal(k_x, (N, semantic_nc, H, W), jnp.float32)
    # Parameters initialized as in equalized-LR layers (unit-normal weights, small biases).
    w1 = jax.random.normal(k_w1, (3, 3, semantic_nc, nhidden), jnp.float32)
    b1 = 0.1 * jax.random.normal(k_b1, (nhidden,), jnp.float32)
    w2 = jax.random.normal(k_w2, (nhidden, 2 * num_features), jnp.float32)
    b2 = 0.1 * jax.random.normal(k_b2, (2 * num_features,), jnp.float32)

    gamma, beta = spade_out(semantic_mask, w1, b1, w2, b2)
    gamma = jax.block_until_ready(gamma)
    beta = jax.block_until_ready(beta)

    g_ref, b_ref = _reference(semantic_mask, w1, b1, w2, b2)
    # Looser tolerance: the kernel runs both matmuls with bf16 MXU inputs (f32 accumulate).
    np.testing.assert_allclose(np.asarray(gamma), np.asarray(g_ref), rtol=2e-2, atol=3e-2)
    np.testing.assert_allclose(np.asarray(beta), np.asarray(b_ref), rtol=2e-2, atol=3e-2)

    print("KERNEL_OK")
</pallas_src>

<mosaic_0001>
module attributes {stable_mosaic.version = 11 : i64} {
  func.func @_spade_out_kernel(%arg0: i32, %arg1: memref<1x16x16x4xbf16, #tpu.memory_space<vmem>>, %arg2: memref<36x32xbf16, #tpu.memory_space<vmem>>, %arg3: memref<1x32xf32, #tpu.memory_space<vmem>>, %arg4: memref<32x8xbf16, #tpu.memory_space<vmem>>, %arg5: memref<1x8xf32, #tpu.memory_space<vmem>>, %arg6: memref<1x16x16x8xf32, #tpu.memory_space<vmem>>, %arg7: memref<18x18x4xbf16, #tpu.memory_space<vmem>>) attributes {dimension_semantics = [#tpu.dimension_semantics<parallel>], iteration_bounds = array<i64: 2>, scalar_prefetch = 0 : i64, scratch_operands = 1 : i64, tpu.core_type = #tpu.core_type<tc>, window_params = [{transform_indices = @transform_0, window_bounds = array<i64: 1, 16, 16, 4>}, {pipeline_mode = #tpu.pipeline_mode<synchronous>, transform_indices = @transform_1, window_bounds = array<i64: 36, 32>}, {pipeline_mode = #tpu.pipeline_mode<synchronous>, transform_indices = @transform_2, window_bounds = array<i64: 1, 32>}, {pipeline_mode = #tpu.pipeline_mode<synchronous>, transform_indices = @transform_3, window_bounds = array<i64: 32, 8>}, {pipeline_mode = #tpu.pipeline_mode<synchronous>, transform_indices = @transform_4, window_bounds = array<i64: 1, 8>}, {transform_indices = @transform_5, window_bounds = array<i64: 1, 16, 16, 8>}]} {
    %cst = arith.constant 0.000000e+00 : bf16
    %0 = vector.broadcast %cst : bf16 to vector<18x18x4xbf16>
    %c0 = arith.constant 0 : index
    %c0_0 = arith.constant 0 : index
    %c0_1 = arith.constant 0 : index
    %1 = vector.load %arg7[%c0, %c0_0, %c0_1] : memref<18x18x4xbf16, #tpu.memory_space<vmem>>, vector<18x18x4xbf16>
    tpu.vector_store %arg7[%c0, %c0_0, %c0_1], %0 {strides = array<i32>} : memref<18x18x4xbf16, #tpu.memory_space<vmem>>, vector<18x18x4xbf16>,
    %c0_2 = arith.constant 0 : index
    %c0_3 = arith.constant 0 : index
    %c0_4 = arith.constant 0 : index
    %c0_5 = arith.constant 0 : index
    %2 = vector.load %arg1[%c0_2, %c0_3, %c0_4, %c0_5] : memref<1x16x16x4xbf16, #tpu.memory_space<vmem>>, vector<1x16x16x4xbf16>
    %3 = vector.shape_cast %2 : vector<1x16x16x4xbf16> to vector<16x16x4xbf16>
    %c1 = arith.constant 1 : index
    %c1_6 = arith.constant 1 : index
    %c0_7 = arith.constant 0 : index
    %4 = vector.load %arg7[%c1, %c1_6, %c0_7] : memref<18x18x4xbf16, #tpu.memory_space<vmem>>, vector<16x16x4xbf16>
    tpu.vector_store %arg7[%c1, %c1_6, %c0_7], %3 {strides = array<i32>} : memref<18x18x4xbf16, #tpu.memory_space<vmem>>, vector<16x16x4xbf16>,
    %c0_8 = arith.constant 0 : index
    %c0_9 = arith.constant 0 : index
    %c0_10 = arith.constant 0 : index
    %5 = vector.load %arg7[%c0_8, %c0_9, %c0_10] : memref<18x18x4xbf16, #tpu.memory_space<vmem>>, vector<18x18x4xbf16>
    %6 = vector.extract_strided_slice %5 {offsets = [0, 0, 0], sizes = [16, 16, 4], strides = [1, 1, 1]} : vector<18x18x4xbf16> to vector<16x16x4xbf16>
    %7 = vector.extract_strided_slice %5 {offsets = [0, 1, 0], sizes = [16, 16, 4], strides = [1, 1, 1]} : vector<18x18x4xbf16> to vector<16x16x4xbf16>
    %8 = vector.extract_strided_slice %5 {offsets = [0, 2, 0], sizes = [16, 16, 4], strides = [1, 1, 1]} : vector<18x18x4xbf16> to vector<16x16x4xbf16>
    %9 = vector.extract_strided_slice %5 {offsets = [1, 0, 0], sizes = [16, 16, 4], strides = [1, 1, 1]} : vector<18x18x4xbf16> to vector<16x16x4xbf16>
    %10 = vector.extract_strided_slice %5 {offsets = [1, 1, 0], sizes = [16, 16, 4], strides = [1, 1, 1]} : vector<18x18x4xbf16> to vector<16x16x4xbf16>
    %11 = vector.extract_strided_slice %5 {offsets = [1, 2, 0], sizes = [16, 16, 4], strides = [1, 1, 1]} : vector<18x18x4xbf16> to vector<16x16x4xbf16>
    %12 = vector.extract_strided_slice %5 {offsets = [2, 0, 0], sizes = [16, 16, 4], strides = [1, 1, 1]} : vector<18x18x4xbf16> to vector<16x16x4xbf16>
    %13 = vector.extract_strided_slice %5 {offsets = [2, 1, 0], sizes = [16, 16, 4], strides = [1, 1, 1]} : vector<18x18x4xbf16> to vector<16x16x4xbf16>
    %14 = vector.extract_strided_slice %5 {offsets = [2, 2, 0], sizes = [16, 16, 4], strides = [1, 1, 1]} : vector<18x18x4xbf16> to vector<16x16x4xbf16>
    %15 = tpu.concatenate %6, %7, %8, %9, %10, %11, %12, %13, %14 in 2 : vector<16x16x4xbf16>, vector<16x16x4xbf16>, vector<16x16x4xbf16>, vector<16x16x4xbf16>, vector<16x16x4xbf16>, vector<16x16x4xbf16>, vector<16x16x4xbf16>, vector<16x16x4xbf16>, vector<16x16x4xbf16> -> vector<16x16x36xbf16>
    %16 = vector.shape_cast %15 : vector<16x16x36xbf16> to vector<256x36xbf16>
    %c0_11 = arith.constant 0 : index
    %c0_12 = arith.constant 0 : index
    %17 = vector.load %arg2[%c0_11, %c0_12] : memref<36x32xbf16, #tpu.memory_space<vmem>>, vector<36x32xbf16>
    %cst_13 = arith.constant dense<0.000000e+00> : vector<256x32xf32>
    %18 = tpu.matmul %16, %17, %cst_13 {dimension_numbers = #tpu.dot_dimension_numbers<[1], [0], [0], [1], [0, 0, 1, 1], [], []>} : vector<256x36xbf16>, vector<36x32xbf16>, vector<256x32xf32> -> vector<256x32xf32>
    %c0_14 = arith.constant 0 : index
    %c0_15 = arith.constant 0 : index
    %19 = vector.load %arg3[%c0_14, %c0_15] : memref<1x32xf32, #tpu.memory_space<vmem>>, vector<1x32xf32>
    %20 = vector.shape_cast %19 : vector<1x32xf32> to vector<32xf32>
    %21 = vector.shape_cast %20 : vector<32xf32> to vector<1x32xf32>
    %22 = vector.broadcast %21 : vector<1x32xf32> to vector<256x32xf32>
    %23 = arith.addf %18, %22 : vector<256x32xf32>
    %cst_16 = arith.constant 0.000000e+00 : f32
    %24 = vector.broadcast %cst_16 : f32 to vector<256x32xf32>
    %25 = arith.cmpf ogt, %23, %24 : vector<256x32xf32>
    %cst_17 = arith.constant 2.000000e-01 : f32
    %26 = vector.broadcast %cst_17 : f32 to vector<256x32xf32>
    %27 = arith.mulf %26, %23 : vector<256x32xf32>
    %28 = arith.select %25, %23, %27 : vector<256x32xi1>, vector<256x32xf32>
    %29 = arith.truncf %28 : vector<256x32xf32> to vector<256x32xbf16>
    %c0_18 = arith.constant 0 : index
    %c0_19 = arith.constant 0 : index
    %30 = vector.load %arg4[%c0_18, %c0_19] : memref<32x8xbf16, #tpu.memory_space<vmem>>, vector<32x8xbf16>
    %cst_20 = arith.constant dense<0.000000e+00> : vector<256x8xf32>
    %31 = tpu.matmul %29, %30, %cst_20 {dimension_numbers = #tpu.dot_dimension_numbers<[1], [0], [0], [1], [0, 0, 1, 1], [], []>} : vector<256x32xbf16>, vector<32x8xbf16>, vector<256x8xf32> -> vector<256x8xf32>
    %c0_21 = arith.constant 0 : index
    %c0_22 = arith.constant 0 : index
    %32 = vector.load %arg5[%c0_21, %c0_22] : memref<1x8xf32, #tpu.memory_space<vmem>>, vector<1x8xf32>
    %33 = vector.shape_cast %32 : vector<1x8xf32> to vector<8xf32>
    %34 = vector.shape_cast %33 : vector<8xf32> to vector<1x8xf32>
    %35 = vector.broadcast %34 : vector<1x8xf32> to vector<256x8xf32>
    %36 = arith.addf %31, %35 : vector<256x8xf32>
    %37 = vector.shape_cast %36 : vector<256x8xf32> to vector<16x16x8xf32>
    %c0_23 = arith.constant 0 : index
    %c0_24 = arith.constant 0 : index
    %c0_25 = arith.constant 0 : index
    %c0_26 = arith.constant 0 : index
    %38 = vector.load %arg6[%c0_23, %c0_24, %c0_25, %c0_26] : memref<1x16x16x8xf32, #tpu.memory_space<vmem>>, vector<1x16x16x8xf32>
    %39 = vector.shape_cast %38 : vector<1x16x16x8xf32> to vector<16x16x8xf32>
    %40 = vector.shape_cast %37 : vector<16x16x8xf32> to vector<1x16x16x8xf32>
    tpu.vector_store %arg6[%c0_23, %c0_24, %c0_25, %c0_26], %40 {strides = array<i32>} : memref<1x16x16x8xf32, #tpu.memory_space<vmem>>, vector<1x16x16x8xf32>,
    return
  }
  func.func @transform_0(%arg0: i32) -> (i32, i32, i32, i32) {
    %c0_i32 = arith.constant 0 : i32
    %c0_i32_0 = arith.constant 0 : i32
    %c0_i32_1 = arith.constant 0 : i32
    %c0_i32_2 = arith.constant 0 : i32
    return %arg0, %c0_i32, %c0_i32_0, %c0_i32_1 : i32, i32, i32, i32
  }
  func.func @transform_1(%arg0: i32) -> (i32, i32) {
    %c0_i32 = arith.constant 0 : i32
    %c0_i32_0 = arith.constant 0 : i32
    %c0_i32_1 = arith.constant 0 : i32
    return %c0_i32, %c0_i32_0 : i32, i32
  }
  func.func @transform_2(%arg0: i32) -> (i32, i32) {
    %c0_i32 = arith.constant 0 : i32
    %c0_i32_0 = arith.constant 0 : i32
    %c0_i32_1 = arith.constant 0 : i32
    return %c0_i32, %c0_i32_0 : i32, i32
  }
  func.func @transform_3(%arg0: i32) -> (i32, i32) {
    %c0_i32 = arith.constant 0 : i32
    %c0_i32_0 = arith.constant 0 : i32
    %c0_i32_1 = arith.constant 0 : i32
    return %c0_i32, %c0_i32_0 : i32, i32
  }
  func.func @transform_4(%arg0: i32) -> (i32, i32) {
    %c0_i32 = arith.constant 0 : i32
    %c0_i32_0 = arith.constant 0 : i32
    %c0_i32_1 = arith.constant 0 : i32
    return %c0_i32, %c0_i32_0 : i32, i32
  }
  func.func @transform_5(%arg0: i32) -> (i32, i32, i32, i32) {
    %c0_i32 = arith.constant 0 : i32
    %c0_i32_0 = arith.constant 0 : i32
    %c0_i32_1 = arith.constant 0 : i32
    %c0_i32_2 = arith.constant 0 : i32
    return %arg0, %c0_i32, %c0_i32_0, %c0_i32_1 : i32, i32, i32, i32
  }
}

</mosaic_0001>

<bundles_post_ra>
// kernel: tpu_custom_call.1
= control target key start
LH: loop header
LB: loop body
LE: loop exit
PB: predicated region body
PF: predicated region fallthrough
CT: control target
= control target key end

     0   :  { %s2710_s18 = smov 0   ;;  %s3607_s0 = inlined_call_operand.vmem [shape: bf16[2,16,16,4], index: 0, kind: input, shape index: {}]   ;;  %s3608_s1 = inlined_call_operand.vmem [shape: bf16[36,32], index: 1, kind: input, shape index: {}]   ;;  %s3609_s2 = inlined_call_operand.vmem [shape: f32[1,32], index: 2, kind: input, shape index: {}]   ;;  %s3610_s3 = inlined_call_operand.vmem [shape: bf16[32,8], index: 3, kind: input, shape index: {}]   ;;  %s3611_s4 = inlined_call_operand.vmem [shape: f32[1,8], index: 4, kind: input, shape index: {}]   ;;  %s3612_s5 = inlined_call_operand.vmem [shape: f32[2,16,16,8], index: 5, kind: output, shape index: {}]  }
   0x1 LB: > { %s2401_s19 = sadd.s32 4294967295, %s2669_s18   ;;  %p2405_p0 = scmp.ge.s32.totalorder %s2669_s18, 1  ;;  %s2669_s18 = sphi %s2710_s18, %s15_s18  }
   0x2   : > { %p187_p1 = scmp.lt.s32.totalorder %s2669_s18, 3 }
   0x4   : > { %p188_p2 = pnand %p2405_p0, %p187_p1 }
   0x5   : > { %vm226_vm0 = vcmask (!%p188_p2), 27648   ;;  %vm229_vm1 = vcmask (!%p188_p2), 24576   ;;  %v2671_v0 = vmov (!%p188_p2), 0   ;;  %p215_p3 = scmp.lt.s32.totalorder (!%p188_p2), %s2401_s19, 1  ;;  %vm314_vm2 = vsmask.f32 (!%p188_p2), 256 }
   0x6   : > { %191 = sbr.rel (%p188_p2) target bundleno = 852 (0x354), region = 40  ;;  %227 = vst.msk [vmem:[#allocation2] sm:$0xf] (!%p188_p2), %vm226_vm0, %v2671_v0  ;;  %228 = vst.msk [vmem:[#allocation2 + $0x4] sm:$0xf] (!%p188_p2), %vm226_vm0, %v2671_v0  ;;  %vm1162_vm6 = vcmask (!%p188_p2), 1046528  }
   0x7   : > { %230 = vst.msk [vmem:[#allocation2 + $0x8] sm:$0x1] (!%p188_p2), %vm229_vm1, %v2671_v0  ;;  %233 = vst.msk [vmem:[#allocation2 + $0x14] sm:$0x1] (!%p188_p2), %vm229_vm1, %v2671_v0  ;;  %vm315_vm3 = vsmask.f32 (!%p188_p2), 4368 }
   0x8   : > { %231 = vst.msk [vmem:[#allocation2 + $0xc] sm:$0xf] (!%p188_p2), %vm226_vm0, %v2671_v0  ;;  %232 = vst.msk [vmem:[#allocation2 + $0x10] sm:$0xf] (!%p188_p2), %vm226_vm0, %v2671_v0  ;;  %vm639_vm4 = vsmask.f32 (!%p188_p2), 7938 }
   0x9   : > { %234 = vst.msk [vmem:[#allocation2 + $0x18] sm:$0xf] (!%p188_p2), %vm226_vm0, %v2671_v0  ;;  %235 = vst.msk [vmem:[#allocation2 + $0x1c] sm:$0xf] (!%p188_p2), %vm226_vm0, %v2671_v0  ;;  %vm937_vm5 = vsmask.f32 (!%p188_p2), 7424 }
   0xa   : > { %236 = vst.msk [vmem:[#allocation2 + $0x20] sm:$0x1] (!%p188_p2), %vm229_vm1, %v2671_v0  ;;  %239 = vst.msk [vmem:[#allocation2 + $0x2c] sm:$0x1] (!%p188_p2), %vm229_vm1, %v2671_v0  ;;  %s2672_s24 = smov (!%p188_p2), 8   ;;  %s2673_s25 = smov (!%p188_p2), 4  }
   0xb   : > { %237 = vst.msk [vmem:[#allocation2 + $0x24] sm:$0xf] (!%p188_p2), %vm226_vm0, %v2671_v0  ;;  %238 = vst.msk [vmem:[#allocation2 + $0x28] sm:$0xf] (!%p188_p2), %vm226_vm0, %v2671_v0  ;;  %s2674_s26 = smov (!%p188_p2), 12   ;;  %s2675_s27 = smov (!%p188_p2), 24  }
   0xc   : > { %240 = vst.msk [vmem:[#allocation2 + $0x30] sm:$0xf] (!%p188_p2), %vm226_vm0, %v2671_v0  ;;  %241 = vst.msk [vmem:[#allocation2 + $0x34] sm:$0xf] (!%p188_p2), %vm226_vm0, %v2671_v0  ;;  %s2676_s30 = smov (!%p188_p2), 20   ;;  %s2677_s8 = smov (!%p188_p2), 32  }
   0xd   : > { %242 = vst.msk [vmem:[#allocation2 + $0x38] sm:$0x1] %vm229_vm1, %v2671_v0  ;;  %245 = vst.msk [vmem:[#allocation2 + $0x44] sm:$0x1] %vm229_vm1, %v2671_v0  ;;  %s3620_s19 = smov (!%p215_p3, %s2401_s19), 1  ;;  %v2618_v4 = vld [vmem:[#allocation2] sm:$0xff]  }
   0xe   : > { %243 = vst.msk [vmem:[#allocation2 + $0x3c] sm:$0xf] %vm226_vm0, %v2671_v0  ;;  %244 = vst.msk [vmem:[#allocation2 + $0x40] sm:$0xf] %vm226_vm0, %v2671_v0  ;;  %s2487_s20 = sshll.u32 %s3620_s19, 7  ;;  %v1163_v11 = vrot.slane %v2618_v4, 1 }
   0xf   : > { %246 = vst.msk [vmem:[#allocation2 + $0x48] sm:$0xf] %vm226_vm0, %v2671_v0  ;;  %247 = vst.msk [vmem:[#allocation2 + $0x4c] sm:$0xf] %vm226_vm0, %v2671_v0  ;;  %s2782_s23 = scalar_lea.vmem %s3607_s0, %s2487_s20  ;;  %v939_v13 = vshrl.u32 %v2618_v4, 16  ;;  %v941_v14 = vshll.u32 %v2618_v4, 16 }
  0x10   : > { %248 = vst.msk [vmem:[#allocation2 + $0x50] sm:$0x1] %vm229_vm1, %v2671_v0  ;;  %251 = vst.msk [vmem:[#allocation2 + $0x5c] sm:$0x1] %vm229_vm1, %v2671_v0  ;;  %v284_v1 = vld [vmem:[%s2782_s23 + $0x8] sm:$0xf] }
  0x11   : > { %249 = vst.msk [vmem:[#allocation2 + $0x54] sm:$0xf] %vm226_vm0, %v2671_v0  ;;  %250 = vst.msk [vmem:[#allocation2 + $0x58] sm:$0xf] %vm226_vm0, %v2671_v0  ;;  %v285_v2 = vld [vmem:[%s2782_s23 + $0xc] sm:$0xf] }
  0x12   : > { %252 = vst.msk [vmem:[#allocation2 + $0x60] sm:$0xf] %vm226_vm0, %v2671_v0  ;;  %253 = vst.msk [vmem:[#allocation2 + $0x64] sm:$0xf] %vm226_vm0, %v2671_v0  ;;  %v282_v3 = vld [vmem:[%s2782_s23] sm:$0xf] }
  0x13   : > { %254 = vst.msk [vmem:[#allocation2 + $0x68] sm:$0x1] %vm229_vm1, %v2671_v0  ;;  %257 = vst.msk [vmem:[#allocation2 + $0x74] sm:$0x1] %vm229_vm1, %v2671_v0  ;;  %v335_v6 = vshrl.u32 %v284_v1, 16  ;;  %v338_v7 = vshll.u32 %v284_v1, 16 }
  0x14   : > { %255 = vst.msk [vmem:[#allocation2 + $0x6c] sm:$0xf] %vm226_vm0, %v2671_v0  ;;  %256 = vst.msk [vmem:[#allocation2 + $0x70] sm:$0xf] %vm226_vm0, %v2671_v0  ;;  %v343_v8 = vshrl.u32 %v285_v2, 16  ;;  %v346_v9 = vshll.u32 %v285_v2, 16 }
  0x15   : > { %258 = vst.msk [vmem:[#allocation2 + $0x78] sm:$0xf] %vm226_vm0, %v2671_v0  ;;  %259 = vst.msk [vmem:[#allocation2 + $0x7c] sm:$0xf] %vm226_vm0, %v2671_v0  ;;  %v283_v10 = vld [vmem:[%s2782_s23 + $0x4] sm:$0xf] }
  0x16   : > { %260 = vst.msk [vmem:[#allocation2 + $0x80] sm:$0x1] %vm229_vm1, %v2671_v0  ;;  %263 = vst.msk [vmem:[#allocation2 + $0x8c] sm:$0x1] %vm229_vm1, %v2671_v0  ;;  %v337_v17 = vrot.slane %v335_v6, 7  ;;  %v345_v18 = vrot.slane %v343_v8, 7 }
  0x17   : > { %261 = vst.msk [vmem:[#allocation2 + $0x84] sm:$0xf] %vm226_vm0, %v2671_v0  ;;  %262 = vst.msk [vmem:[#allocation2 + $0x88] sm:$0xf] %vm226_vm0, %v2671_v0  ;;  %v650_v19 = vld [vmem:[#allocation2 + $0x18] sm:$0xf] }
  0x18   : > { %264 = vst.msk [vmem:[#allocation2 + $0x90] sm:$0xf] %vm226_vm0, %v2671_v0  ;;  %265 = vst.msk [vmem:[#allocation2 + $0x94] sm:$0xf] %vm226_vm0, %v2671_v0  ;;  %v318_v20 = vshrl.u32 %v282_v3, 16  ;;  %v943_v22 = vrot.slane %v941_v14, 1  ;;  %v340_v28 = vor.u32 %v338_v7, %v337_v17  ;;  %v348_v30 = vor.u32 %v346_v9, %v345_v18 }
  0x19   : > { %266 = vst.msk [vmem:[#allocation2 + $0x98] sm:$0x1] %vm229_vm1, %v2671_v0  ;;  %269 = vst.msk [vmem:[#allocation2 + $0xa4] sm:$0x1] %vm229_vm1, %v2671_v0  ;;  %v321_v24 = vshll.u32 %v282_v3, 16  ;;  %v326_v25 = vshrl.u32 %v283_v10, 16 }
  0x1a   : > { %267 = vst.msk [vmem:[#allocation2 + $0x9c] sm:$0xf] %vm226_vm0, %v2671_v0  ;;  %268 = vst.msk [vmem:[#allocation2 + $0xa0] sm:$0xf] %vm226_vm0, %v2671_v0  ;;  %v286_v26 = vld [vmem:[%s2782_s23 + $0x10] sm:$0xf]  ;;  %v944_v31 = vor.u32 %v943_v22, %v939_v13 }
  0x1b   : > { %270 = vst.msk [vmem:[#allocation2 + $0xa8] sm:$0xf] %vm226_vm0, %v2671_v0  ;;  %271 = vst.msk [vmem:[#allocation2 + $0xac] sm:$0xf] %vm226_vm0, %v2671_v0  ;;  %v341_v29 = vrot.slane %v337_v17, 4  ;;  %v320_v32 = vrot.slane %v318_v20, 7 }
  0x1c   : > { %272 = vst.msk [vmem:[#allocation2 + $0xb0] sm:$0x1] %vm229_vm1, %v2671_v0  ;;  %275 = vst.msk [vmem:[#allocation2 + $0xbc] sm:$0x1] %vm229_vm1, %v2671_v0  ;;  %v328_v33 = vrot.slane %v326_v25, 7  ;;  %v329_v34 = vshll.u32 %v283_v10, 16 }
  0x1d   : > { %273 = vst.msk [vmem:[#allocation2 + $0xb4] sm:$0xf] %vm226_vm0, %v2671_v0  ;;  %274 = vst.msk [vmem:[#allocation2 + $0xb8] sm:$0xf] %vm226_vm0, %v2671_v0  ;;  %v287_v35 = vld [vmem:[%s2782_s23 + $0x14] sm:$0xf]  ;;  %v323_v43 = vor.u32 %v321_v24, %v320_v32 }
  0x1e   : > { %276 = vst.msk [vmem:[#allocation2 + $0xc0] sm:$0xf] %vm226_vm0, %v2671_v0  ;;  %277 = vst.msk [vmem:[#allocation2 + $0xc4] sm:$0xf] %vm226_vm0, %v2671_v0  ;;  %v641_v38 = vld [vmem:[#allocation2 + $0xc] sm:$0xf]  ;;  %v331_v45 = vor.u32 %v329_v34, %v328_v33 }
  0x1f   : > { %278 = vst.msk [vmem:[#allocation2 + $0xc8] sm:$0x1] %vm229_vm1, %v2671_v0  ;;  %281 = vst.msk [vmem:[#allocation2 + $0xd4] sm:$0x1] %vm229_vm1, %v2671_v0  ;;  %v352_v39 = vshrl.u32 %v286_v26, 16  ;;  %v355_v40 = vshll.u32 %v286_v26, 16 }
  0x20   : > { %279 = vst.msk [vmem:[#allocation2 + $0xcc] sm:$0xf] %vm226_vm0, %v2671_v0  ;;  %280 = vst.msk [vmem:[#allocation2 + $0xd0] sm:$0xf] %vm226_vm0, %v2671_v0  ;;  %v288_v41 = vld [vmem:[%s2782_s23 + $0x18] sm:$0xf] }
  0x21   : > { %v2619_v5 = vld [vmem:[#allocation2 + $0x8] ss:$0 sps:$4 sm:$0x11]   ;;  %vm2790_vm7 = vmor %vm314_vm2, %vm315_vm3  ;;  %v324_v44 = vrot.slane %v320_v32, 4  ;;  %v647_v47 = vld [vmem:[#allocation2 + $0x14] sm:$0x1] }
  0x22   : > { %v1164_v12 = vrot.slane %v2619_v5, 1  ;;  %v946_v15 = vshll.u32 %v2619_v5, 16  ;;  %vm2797_vm8 = vmand %vm226_vm0, %vm639_vm4  ;;  %v349_v36 = vsel %vm2790_vm7, %v341_v29, %v348_v30  ;;  %v654_v48 = vld [vmem:[#allocation2 + $0x20] sm:$0x1]  ;;  %v354_v49 = vrot.slane %v352_v39, 7  ;;  %s2678_s9 = smov 16  }
  0x23   : > { %v651_v37 = vsel %vm2797_vm8, %v340_v28, %v650_v19  ;;  %653 = vst.msk [vmem:[#allocation2 + $0x1c] sm:$0xf] %vm226_vm0, %v349_v36  ;;  %vm2813_vm9 = vmand %vm229_vm1, %vm314_vm2  ;;  %v360_v50 = vshrl.u32 %v287_v35, 16  ;;  %v363_v51 = vshll.u32 %v287_v35, 16  ;;  %v333_v52 = vrot.slane %v328_v33, 4  ;;  %s2679_s10 = smov 28  }
  0x24   : > { %v1165_v21 = vsel %vm1162_vm6, %v1163_v11, %v1164_v12  ;;  %v948_v27 = vrot.slane %v946_v15, 1  ;;  %652 = vst [vmem:[#allocation2 + $0x18] sm:$0xf] %v651_v37  ;;  %v289_v53 = vld [vmem:[%s2782_s23 + $0x1c] sm:$0xf]  ;;  %v332_v54 = vsel %vm2790_vm7, %v324_v44, %v331_v45  ;;  %v642_v55 = vsel %vm2797_vm8, %v323_v43, %v641_v38  ;;  %s2488_s21 = sshll.u32 %s3620_s19, 8 }
  0x25   : > { %1211 = vrot.lane.b32.xlu1 %v1165_v21, %s2672_s24  ;;  %v657_v56 = vld [vmem:[#allocation2 + $0x24] sm:$0xf]  ;;  %v350_v57 = vrot.slane %v345_v18, 4  ;;  %v369_v58 = vshrl.u32 %v288_v41, 16  ;;  %643 = vst [vmem:[#allocation2 + $0xc] sm:$0xf] %v642_v55  ;;  %v357_v59 = vor.u32 %v355_v40, %v354_v49  ;;  %v648_v62 = vsel %vm2813_vm9, %v333_v52, %v647_v47 }
  0x26   : > { %v949_v42 = vsel %vm937_vm5, %v944_v31, %v948_v27  ;;  %644 = vst.msk [vmem:[#allocation2 + $0x10] sm:$0xf] %vm226_vm0, %v332_v54  ;;  %v358_v60 = vrot.slane %v354_v49, 4  ;;  %v362_v61 = vrot.slane %v360_v50, 7  ;;  %v290_v63 = vld [vmem:[%s2782_s23 + $0x20] sm:$0xf] }
  0x27   : > { %1130 = vrot.lane.b32.xlu0 %v949_v42, %s2673_s25  ;;  %649 = vst [vmem:[#allocation2 + $0x14] sm:$0x1] %v648_v62  ;;  %v655_v0 = vsel %vm2813_vm9, %v350_v57, %v654_v48  ;;  %v661_v1 = vld [vmem:[#allocation2 + $0x2c] sm:$0x1]  ;;  %v371_v2 = vrot.slane %v369_v58, 7  ;;  %v372_v3 = vshll.u32 %v288_v41, 16  ;;  %v658_v6 = vsel %vm2797_vm8, %v357_v59, %v657_v56 }
  0x28   : > { %v377_v4 = vshrl.u32 %v289_v53, 16  ;;  %v365_v5 = vor.u32 %v363_v51, %v362_v61  ;;  %656 = vst [vmem:[#allocation2 + $0x20] sm:$0x1] %v655_v0  ;;  %v367_v7 = vrot.slane %v362_v61, 4  ;;  %v380_v8 = vshll.u32 %v289_v53, 16  ;;  %v2638_v54 = vld [vmem:[%s3608_s1] sm:$0xff]  }
  0x29   : > { %v664_v9 = vld [vmem:[#allocation2 + $0x30] sm:$0xf]  ;;  %v668_v10 = vld [vmem:[#allocation2 + $0x38] sm:$0x1]  ;;  %659 = vst [vmem:[#allocation2 + $0x24] sm:$0xf] %v658_v6  ;;  %v374_v11 = vor.u32 %v372_v3, %v371_v2  ;;  %2526 = vmatprep.subr.bf16.mxu0 %v2638_v54 }
  0x2a   : > { %v375_v12 = vrot.slane %v371_v2, 4  ;;  %v379_v13 = vrot.slane %v377_v4, 7  ;;  %v291_v14 = vld [vmem:[%s2782_s23 + $0x24] sm:$0xf]  ;;  %v386_v15 = vshrl.u32 %v290_v63, 16  ;;  %v366_v18 = vsel %vm2790_vm7, %v358_v60, %v365_v5  ;;  %2527 = vmatpush3.bf16.msra.mxu0 %v2638_v54 }
  0x2b   : > { %v2832_v17 = vld [vmem:[#allocation2 + $0x18] sm:$0xff]   ;;  %v662_v19 = vsel %vm2813_vm9, %v367_v7, %v661_v1  ;;  %v389_v20 = vshll.u32 %v290_v63, 16  ;;  %660 = vst.msk [vmem:[#allocation2 + $0x28] sm:$0xf] %vm226_vm0, %v366_v18  ;;  %v665_v22 = vsel %vm2797_vm8, %v374_v11, %v664_v9  ;;  %v394_v32 = vshrl.u32 %v291_v14, 16  ;;  %v2640_v1 = vld [vmem:[%s3608_s1 + $0x8] sm:$0xff]  }
  0x2c   : > { %663 = vst [vmem:[#allocation2 + $0x2c] sm:$0x1] %v662_v19  ;;  %v382_v21 = vor.u32 %v380_v8, %v379_v13  ;;  %v384_v24 = vrot.slane %v379_v13, 4  ;;  %v388_v25 = vrot.slane %v386_v15, 7  ;;  %1250 = vrot.lane.b32.xlu1 %v2832_v17, %s2674_s26  ;;  %v965_v26 = vshll.u32 %v2832_v17, 16  ;;  %2528 = vmatprep.subr.bf16.mxu0 %v2640_v1 }
  0x2d   : > { %666 = vst [vmem:[#allocation2 + $0x30] sm:$0xf] %v665_v22  ;;  %v671_v27 = vld [vmem:[#allocation2 + $0x3c] sm:$0xf]  ;;  %v2844_v28 = vld [vmem:[#allocation2 + $0xc] sm:$0xff]   ;;  %v963_v39 = vshrl.u32 %v2832_v17, 16 }
  0x2e   : > { %v383_v29 = vsel %vm2790_vm7, %v375_v12, %v382_v21  ;;  %v669_v30 = vsel %vm2813_vm9, %v384_v24, %v668_v10  ;;  %v391_v31 = vor.u32 %v389_v20, %v388_v25  ;;  %v2623_v33 = vld [vmem:[#allocation2 + $0x14] ss:$0 sps:$4 sm:$0x11]   ;;  %1248 = vrot.lane.b32.xlu0 %v2844_v28, %s2674_s26  ;;  %v1166_v36 = vrot.slane %v2844_v28, 1  ;;  %v292_v62 = vld [vmem:[%s2782_s23 + $0x28] sm:$0xf]  ;;  %2529 = vmatpush3.bf16.msra.mxu0 %v2640_v1 }
  0x2f   : > { %667 = vst.msk [vmem:[#allocation2 + $0x34] sm:$0xf] %vm226_vm0, %v383_v29  ;;  %670 = vst [vmem:[#allocation2 + $0x38] sm:$0x1] %v669_v30  ;;  %v1167_v37 = vrot.slane %v2623_v33, 1  ;;  %v953_v38 = vshll.u32 %v2844_v28, 16 }
  0x30   : > { %v2624_v34 = vld [vmem:[#allocation2 + $0x20] ss:$0 sps:$4 sm:$0x11]   ;;  %v672_v35 = vsel %vm2797_vm8, %v391_v31, %v671_v27  ;;  %v967_v40 = vrot.slane %v965_v26, 1  ;;  %v951_v41 = vshrl.u32 %v2844_v28, 16  ;;  %v396_v42 = vrot.slane %v394_v32, 7 }
  0x31   : > { %673 = vst [vmem:[#allocation2 + $0x3c] sm:$0xf] %v672_v35  ;;  %v970_v44 = vshll.u32 %v2624_v34, 16  ;;  %v955_v45 = vrot.slane %v953_v38, 1  ;;  %v958_v47 = vshll.u32 %v2623_v33, 16  ;;  %v397_v49 = vshll.u32 %v291_v14, 16 }
  0x32   : > { %v2859_v43 = vld [vmem:[#allocation2 + $0x24] sm:$0xff]   ;;  %1367 = vrot.lane.b32.xlu0 %v2832_v17, %s2675_s27  ;;  %v1168_v50 = vsel %vm1162_vm6, %v1166_v36, %v1167_v37  ;;  %v1169_v51 = vrot.slane %v2832_v17, 1  ;;  %v1170_v52 = vrot.slane %v2624_v34, 1  ;;  %v392_v57 = vrot.slane %v388_v25, 4  ;;  %v293_v5 = vld [vmem:[%s2782_s23 + $0x2c] sm:$0xf] }
  0x33   : > { %v2863_v48 = vld [vmem:[#allocation2 + $0x2c] ss:$0 sps:$4 sm:$0x11]   ;;  %1369 = vrot.lane.b32.xlu1 %v2859_v43, %s2675_s27  ;;  %v977_v53 = vshll.u32 %v2859_v43, 16  ;;  %v975_v55 = vshrl.u32 %v2859_v43, 16  ;;  %v399_v58 = vor.u32 %v397_v49, %v396_v42  ;;  %v968_v59 = vor.u32 %v967_v40, %v963_v39 }
  0x34   : > { %v982_v56 = vshll.u32 %v2863_v48, 16  ;;  %v972_v60 = vrot.slane %v970_v44, 1  ;;  %v956_v63 = vor.u32 %v955_v45, %v951_v41  ;;  %v960_v0 = vrot.slane %v958_v47, 1  ;;  %v675_v4 = vld [vmem:[#allocation2 + $0x44] sm:$0x1] }
  0x35   : > { %v979_v61 = vrot.slane %v977_v53, 1  ;;  %v2882_v2 = vsel %vm1162_vm6, %v1169_v51, %v1170_v52  ;;  %v400_v7 = vsel %vm2790_vm7, %v392_v57, %v399_v58  ;;  %v401_v8 = vrot.slane %v396_v42, 4  ;;  %v294_v10 = vld [vmem:[%s2782_s23 + $0x30] sm:$0xf]  ;;  %v295_v11 = vld [vmem:[%s2782_s23 + $0x34] sm:$0xf] }
  0x36   : > { %1330 = vrot.lane.b32.xlu0 %v1168_v50, %s2676_s30  ;;  %v984_v3 = vrot.slane %v982_v56, 1  ;;  %v403_v9 = vshrl.u32 %v292_v62, 16  ;;  %v2890_v12 = vsel %vm937_vm5, %v968_v59, %v972_v60  ;;  %674 = vst.msk [vmem:[#allocation2 + $0x40] sm:$0xf] %vm226_vm0, %v400_v7  ;;  %v406_v13 = vshll.u32 %v292_v62, 16 }
  0x37   : > { %1213 = vrot.lane.b32.xlu1 %v1168_v50, %s2672_s24  ;;  %v980_v6 = vor.u32 %v979_v61, %v975_v55  ;;  %v961_v14 = vsel %vm937_vm5, %v956_v63, %v960_v0  ;;  %v676_v15 = vsel %vm2813_vm9, %v401_v8, %v675_v4  ;;  %v411_v18 = vshrl.u32 %v293_v5, 16  ;;  %v296_v19 = vld [vmem:[%s2782_s23 + $0x38] sm:$0xf]  ;;  %v678_v21 = vld [vmem:[#allocation2 + $0x48] sm:$0xf] }
  0x38   : > { %v405_v17 = vrot.slane %v403_v9, 7  ;;  %677 = vst [vmem:[#allocation2 + $0x44] sm:$0x1] %v676_v15  ;;  %v414_v20 = vshll.u32 %v293_v5, 16  ;;  %v420_v22 = vshrl.u32 %v294_v10, 16  ;;  %v423_v24 = vshll.u32 %v294_v10, 16 }
  0x39   : > { %v428_v25 = vshrl.u32 %v295_v11, 16  ;;  %v2902_v26 = vsel %vm937_vm5, %v980_v6, %v984_v3  ;;  %v413_v30 = vrot.slane %v411_v18, 7  ;;  %v682_v31 = vld [vmem:[#allocation2 + $0x50] sm:$0x1]  ;;  %v431_v34 = vshll.u32 %v295_v11, 16 }
  0x3a   : > { %1449 = vrot.lane.b32.xlu0 %v2882_v2, %s2677_s8  ;;  %v408_v27 = vor.u32 %v406_v13, %v405_v17  ;;  %v409_v29 = vrot.slane %v405_v17, 4  ;;  %v422_v32 = vrot.slane %v420_v22, 7  ;;  %v297_v35 = vld [vmem:[%s2782_s23 + $0x3c] sm:$0xf]  ;;  %v437_v36 = vshrl.u32 %v296_v19, 16  ;;  %v2929_v3 = vld [vmem:[#allocation2 + $0x30] sm:$0xff]  }
  0x3b   : > { %1332 = vrot.lane.b32.xlu1 %v2882_v2, %s2676_s30  ;;  %v430_v33 = vrot.slane %v428_v25, 7  ;;  %v416_v37 = vor.u32 %v414_v20, %v413_v30  ;;  %v418_v39 = vrot.slane %v413_v30, 4  ;;  %v685_v40 = vld [vmem:[#allocation2 + $0x54] sm:$0xf]  ;;  %v689_v41 = vld [vmem:[#allocation2 + $0x5c] sm:$0x1] }
  0x3c   : > { %v679_v38 = vsel %vm2797_vm8, %v408_v27, %v678_v21  ;;  %v440_v42 = vshll.u32 %v296_v19, 16  ;;  %v425_v44 = vor.u32 %v423_v24, %v422_v32  ;;  %v426_v45 = vrot.slane %v422_v32, 4  ;;  %v692_v58 = vld [vmem:[#allocation2 + $0x60] sm:$0xf]  ;;  %v299_v1 = vld [vmem:[%s2782_s23 + $0x44] sm:$0xf] }
  0x3d   : > { %680 = vst [vmem:[#allocation2 + $0x48] sm:$0xf] %v679_v38  ;;  %v433_v47 = vor.u32 %v431_v34, %v430_v33  ;;  %v435_v49 = vrot.slane %v430_v33, 4  ;;  %v417_v50 = vsel %vm2790_vm7, %v409_v29, %v416_v37  ;;  %v683_v51 = vsel %vm2813_vm9, %v418_v39, %v682_v31  ;;  %v298_v60 = vld [vmem:[%s2782_s23 + $0x40] sm:$0xf] }
  0x3e   : > { %1132 = vrot.lane.b32.xlu0 %v961_v14, %s2673_s25  ;;  %v439_v52 = vrot.slane %v437_v36, 7  ;;  %v445_v53 = vshrl.u32 %v297_v35, 16  ;;  %681 = vst.msk [vmem:[#allocation2 + $0x4c] sm:$0xf] %vm226_vm0, %v417_v50  ;;  %684 = vst [vmem:[#allocation2 + $0x50] sm:$0x1] %v683_v51  ;;  %v686_v55 = vsel %vm2797_vm8, %v425_v44, %v685_v40 }
  0x3f   : > { %1297 = vrot.lane.b32.xlu1 %v2890_v12, %s2678_s9  ;;  %v434_v54 = vsel %vm2790_vm7, %v426_v45, %v433_v47  ;;  %v690_v56 = vsel %vm2813_vm9, %v435_v49, %v689_v41  ;;  %v448_v57 = vshll.u32 %v297_v35, 16  ;;  %687 = vst [vmem:[#allocation2 + $0x54] sm:$0xf] %v686_v55  ;;  %v1172_v61 = vrot.slane %v2859_v43, 1  ;;  %v696_v5 = vld [vmem:[#allocation2 + $0x68] sm:$0x1] }
  0x40   : > { %688 = vst.msk [vmem:[#allocation2 + $0x58] sm:$0xf] %vm226_vm0, %v434_v54  ;;  %691 = vst [vmem:[#allocation2 + $0x5c] sm:$0x1] %v690_v56  ;;  %v442_v59 = vor.u32 %v440_v42, %v439_v52  ;;  %v1173_v62 = vrot.slane %v2863_v48, 1  ;;  %v443_v63 = vrot.slane %v439_v52, 4 }
  0x41   : > { %v447_v0 = vrot.slane %v445_v53, 7  ;;  %v454_v8 = vshrl.u32 %v298_v60, 16  ;;  %v457_v9 = vshll.u32 %v298_v60, 16  ;;  %v462_v10 = vshrl.u32 %v299_v1, 16  ;;  %v699_v19 = vld [vmem:[#allocation2 + $0x6c] sm:$0xf] }
  0x42   : > { %1295 = vrot.lane.b32.xlu0 %v961_v14, %s2678_s9  ;;  %v693_v4 = vsel %vm2797_vm8, %v442_v59, %v692_v58  ;;  %v2938_v48 = vsel %vm1162_vm6, %v1172_v61, %v1173_v62  ;;  %v2627_v11 = vld [vmem:[#allocation2 + $0x38] ss:$0 sps:$4 sm:$0x11]   ;;  %v989_v17 = vshll.u32 %v2929_v3, 16  ;;  %v987_v20 = vshrl.u32 %v2929_v3, 16  ;;  %v2958_v33 = vld [vmem:[#allocation2 + $0x3c] sm:$0xff]  }
  0x43   : > { %1416 = vrot.lane.b32.xlu1 %v2902_v26, %s2679_s10  ;;  %v450_v6 = vor.u32 %v448_v57, %v447_v0  ;;  %694 = vst [vmem:[#allocation2 + $0x60] sm:$0xf] %v693_v4  ;;  %v452_v7 = vrot.slane %v447_v0, 4  ;;  %v456_v15 = vrot.slane %v454_v8, 7  ;;  %v994_v21 = vshll.u32 %v2627_v11, 16 }
  0x44   : > { %v991_v22 = vrot.slane %v989_v17, 1  ;;  %v465_v25 = vshll.u32 %v299_v1, 16  ;;  %v300_v30 = vld [vmem:[%s2782_s23 + $0x48] sm:$0xf]  ;;  %v703_v35 = vld [vmem:[#allocation2 + $0x74] sm:$0x1] }
  0x45   : > { %v451_v13 = vsel %vm2790_vm7, %v443_v63, %v450_v6  ;;  %v697_v14 = vsel %vm2813_vm9, %v452_v7, %v696_v5  ;;  %v459_v18 = vor.u32 %v457_v9, %v456_v15  ;;  %v460_v24 = vrot.slane %v456_v15, 4  ;;  %v301_v36 = vld [vmem:[%s2782_s23 + $0x4c] sm:$0xf]  ;;  %v2642_v40 = vld [vmem:[%s3608_s1 + $0x10] ss:$0 sps:$4 sm:$0x33]  }
  0x46   : > { %1414 = vrot.lane.b32.xlu0 %v2890_v12, %s2679_s10  ;;  %695 = vst.msk [vmem:[#allocation2 + $0x64] sm:$0xf] %vm226_vm0, %v451_v13  ;;  %698 = vst [vmem:[#allocation2 + $0x68] sm:$0x1] %v697_v14  ;;  %v992_v31 = vor.u32 %v991_v22, %v987_v20  ;;  %v996_v32 = vrot.slane %v994_v21, 1  ;;  %v1175_v37 = vrot.slane %v2929_v3, 1 }
  0x47   : > { %1134 = vrot.lane.b32.xlu1 %v2890_v12, %s2673_s25  ;;  %v464_v12 = vrot.slane %v462_v10, 7  ;;  %v700_v27 = vsel %vm2797_vm8, %v459_v18, %v699_v19  ;;  %v1176_v38 = vrot.slane %v2627_v11, 1  ;;  %v471_v39 = vshrl.u32 %v300_v30, 16  ;;  %v2972_v41 = vld [vmem:[#allocation2 + $0x44] ss:$0 sps:$4 sm:$0x11]  }
  0x48   : > { %701 = vst [vmem:[#allocation2 + $0x6c] sm:$0xf] %v700_v27  ;;  %v474_v44 = vshll.u32 %v300_v30, 16  ;;  %v479_v45 = vshrl.u32 %v301_v36, 16  ;;  %v706_v47 = vld [vmem:[#allocation2 + $0x78] sm:$0xf]  ;;  %v2977_v49 = vsel %vm937_vm5, %v992_v31, %v996_v32 }
  0x49   : > { %v467_v29 = vor.u32 %v465_v25, %v464_v12  ;;  %v473_v50 = vrot.slane %v471_v39, 7  ;;  %v482_v51 = vshll.u32 %v301_v36, 16  ;;  %v710_v53 = vld [vmem:[#allocation2 + $0x80] sm:$0x1]  ;;  %v2983_v54 = vsel %vm1162_vm6, %v1175_v37, %v1176_v38  ;;  %v302_v57 = vld [vmem:[%s2782_s23 + $0x50] sm:$0xf] }
  0x4a   : > { %1451 = vrot.lane.b32.xlu0 %v2938_v48, %s2677_s8  ;;  %v481_v52 = vrot.slane %v479_v45, 7  ;;  %v1006_v58 = vshll.u32 %v2972_v41, 16  ;;  %vm1805_vm10 = vcmask 1041408   ;;  %v303_v61 = vld [vmem:[%s2782_s23 + $0x54] sm:$0xf]  ;;  %v999_v62 = vshrl.u32 %v2958_v33, 16 }
  0x4b   : > { %1136 = vrot.lane.b32.xlu1 %v2902_v26, %s2673_s25  ;;  %v468_v34 = vsel %vm2790_vm7, %v460_v24, %v467_v29  ;;  %v476_v55 = vor.u32 %v474_v44, %v473_v50  ;;  %v477_v56 = vrot.slane %v473_v50, 4  ;;  %2600 = vmatprep.subr.msk.bf16.mxu0 %vm1805_vm10, %v2642_v40  ;;  %v1807_v0 = vsel %vm1805_vm10, %v2642_v40, 0  ;;  %v304_v7 = vld [vmem:[%s2782_s23 + $0x58] sm:$0xf]  ;;  %v713_v15 = vld [vmem:[#allocation2 + $0x84] sm:$0xf] }
  0x4c   : > { %702 = vst.msk [vmem:[#allocation2 + $0x70] sm:$0xf] %vm226_vm0, %v468_v34  ;;  %v484_v59 = vor.u32 %v482_v51, %v481_v52  ;;  %v486_v60 = vrot.slane %v481_v52, 4  ;;  %2531 = vmatpush3.bf16.msra.mxu0 %v1807_v0  ;;  %v488_v5 = vshrl.u32 %v302_v57, 16  ;;  %v491_v6 = vshll.u32 %v302_v57, 16  ;;  %v3021_v36 = vld [vmem:[#allocation2 + $0x48] sm:$0xff]  }
  0x4d   : > { %v496_v8 = vshrl.u32 %v303_v61, 16  ;;  %v1008_v9 = vrot.slane %v1006_v58, 1  ;;  %v499_v14 = vshll.u32 %v303_v61, 16  ;;  %v505_v17 = vshrl.u32 %v304_v7, 16  ;;  %v305_v20 = vld [vmem:[%s2782_s23 + $0x5c] sm:$0xf] }
  0x4e   : > { %1215 = vrot.lane.b32.xlu0 %v2882_v2, %s2672_s24  ;;  %v469_v2 = vrot.slane %v464_v12, 4  ;;  %v485_v1 = vsel %vm2790_vm7, %v477_v56, %v484_v59  ;;  %v711_v4 = vsel %vm2813_vm9, %v486_v60, %v710_v53  ;;  %v490_v10 = vrot.slane %v488_v5, 7  ;;  %v717_v12 = vld [vmem:[#allocation2 + $0x8c] sm:$0x1]  ;;  %v306_v27 = vld [vmem:[%s2782_s23 + $0x60] sm:$0xf] }
  0x4f   : > { %1217 = vrot.lane.b32.xlu1 %v2938_v48, %s2672_s24  ;;  %709 = vst.msk [vmem:[#allocation2 + $0x7c] sm:$0xf] %vm226_vm0, %v485_v1  ;;  %712 = vst [vmem:[#allocation2 + $0x80] sm:$0x1] %v711_v4  ;;  %v498_v13 = vrot.slane %v496_v8, 7  ;;  %v507_v22 = vrot.slane %v505_v17, 7 }
  0x50   : > { %v704_v42 = vsel %vm2813_vm9, %v469_v2, %v703_v35  ;;  %v493_v18 = vor.u32 %v491_v6, %v490_v10  ;;  %v494_v19 = vrot.slane %v490_v10, 4  ;;  %v508_v25 = vshll.u32 %v304_v7, 16  ;;  %v720_v32 = vld [vmem:[#allocation2 + $0x90] sm:$0xf]  ;;  %v307_v2 = vld [vmem:[%s2782_s23 + $0x64] sm:$0xf] }
  0x51   : > { %705 = vst [vmem:[#allocation2 + $0x74] sm:$0x1] %v704_v42  ;;  %v503_v21 = vrot.slane %v498_v13, 4  ;;  %v513_v31 = vshrl.u32 %v305_v20, 16  ;;  %v516_v35 = vshll.u32 %v305_v20, 16  ;;  %v511_v37 = vrot.slane %v507_v22, 4 }
  0x52   : > { %1252 = vrot.lane.b32.xlu0 %v2859_v43, %s2674_s26  ;;  %v1001_v43 = vshll.u32 %v2958_v33, 16  ;;  %v714_v24 = vsel %vm2797_vm8, %v493_v18, %v713_v15  ;;  %v510_v34 = vor.u32 %v508_v25, %v507_v22  ;;  %v522_v39 = vshrl.u32 %v306_v27, 16  ;;  %v724_v45 = vld [vmem:[#allocation2 + $0x98] sm:$0x1]  ;;  %v727_v59 = vld [vmem:[#allocation2 + $0x9c] sm:$0xf] }
  0x53   : > { %1254 = vrot.lane.b32.xlu1 %v2929_v3, %s2674_s26  ;;  %715 = vst [vmem:[#allocation2 + $0x84] sm:$0xf] %v714_v24  ;;  %v515_v38 = vrot.slane %v513_v31, 7  ;;  %v1178_v40 = vrot.slane %v2958_v33, 1  ;;  %v1179_v42 = vrot.slane %v2972_v41, 1  ;;  %v530_v52 = vshrl.u32 %v307_v2, 16 }
  0x54   : > { %v1003_v63 = vrot.slane %v1001_v43, 1  ;;  %v721_v44 = vsel %vm2797_vm8, %v510_v34, %v720_v32  ;;  %v524_v51 = vrot.slane %v522_v39, 7  ;;  %v533_v53 = vshll.u32 %v307_v2, 16  ;;  %v3033_v56 = vld [vmem:[#allocation2 + $0x50] ss:$0 sps:$4 sm:$0x11]  }
  0x55   : > { %v518_v43 = vor.u32 %v516_v35, %v515_v38  ;;  %722 = vst [vmem:[#allocation2 + $0x90] sm:$0xf] %v721_v44  ;;  %v520_v50 = vrot.slane %v515_v38, 4  ;;  %v1013_v57 = vshll.u32 %v3021_v36, 16  ;;  %v3043_v60 = vsel %vm1162_vm6, %v1178_v40, %v1179_v42  ;;  %v309_v6 = vld [vmem:[%s2782_s23 + $0x6c] sm:$0xf] }
  0x56   : > { %1299 = vrot.lane.b32.xlu0 %v2902_v26, %s2678_s9  ;;  %v707_v26 = vsel %vm2797_vm8, %v476_v55, %v706_v47  ;;  %v1004_v11 = vor.u32 %v1003_v63, %v999_v62  ;;  %v525_v47 = vshll.u32 %v306_v27, 16  ;;  %v308_v55 = vld [vmem:[%s2782_s23 + $0x68] sm:$0xf]  ;;  %v528_v62 = vrot.slane %v524_v51, 4  ;;  %v3066_v24 = vld [vmem:[#allocation2 + $0x54] sm:$0xff]  }
  0x57   : > { %1301 = vrot.lane.b32.xlu1 %v2977_v49, %s2678_s9  ;;  %708 = vst [vmem:[#allocation2 + $0x78] sm:$0xf] %v707_v26  ;;  %v519_v41 = vsel %vm2790_vm7, %v511_v37, %v518_v43  ;;  %v725_v58 = vsel %vm2813_vm9, %v520_v50, %v724_v45  ;;  %v532_v63 = vrot.slane %v530_v52, 7  ;;  %v731_v26 = vld [vmem:[#allocation2 + $0xa4] sm:$0x1]  ;;  %v539_v0 = vshrl.u32 %v308_v55, 16 }
  0x58   : > { %v3012_v29 = vsel %vm937_vm5, %v1004_v11, %v1008_v9  ;;  %723 = vst.msk [vmem:[#allocation2 + $0x94] sm:$0xf] %vm226_vm0, %v519_v41  ;;  %726 = vst [vmem:[#allocation2 + $0x98] sm:$0x1] %v725_v58  ;;  %v527_v61 = vor.u32 %v525_v47, %v524_v51  ;;  %v1011_v8 = vshrl.u32 %v3021_v36, 16  ;;  %v1015_v9 = vrot.slane %v1013_v57, 1 }
  0x59   : > { %v535_v1 = vor.u32 %v533_v53, %v532_v63  ;;  %v537_v5 = vrot.slane %v532_v63, 4  ;;  %v541_v7 = vrot.slane %v539_v0, 7  ;;  %v547_v15 = vshrl.u32 %v309_v6, 16  ;;  %v734_v18 = vld [vmem:[#allocation2 + $0xa8] sm:$0xf] }
  0x5a   : > { %1334 = vrot.lane.b32.xlu0 %v2938_v48, %s2676_s30  ;;  %v501_v48 = vor.u32 %v499_v14, %v498_v13  ;;  %v728_v4 = vsel %vm2797_vm8, %v527_v61, %v727_v59  ;;  %v310_v13 = vld [vmem:[%s2782_s23 + $0x70] sm:$0xf]  ;;  %v542_v14 = vshll.u32 %v308_v55, 16  ;;  %v550_v17 = vshll.u32 %v309_v6, 16  ;;  %v741_v38 = vld [vmem:[#allocation2 + $0xb4] sm:$0xf] }
  0x5b   : > { %1336 = vrot.lane.b32.xlu1 %v2983_v54, %s2676_s30  ;;  %729 = vst [vmem:[#allocation2 + $0x9c] sm:$0xf] %v728_v4  ;;  %v536_v10 = vsel %vm2790_vm7, %v528_v62, %v535_v1  ;;  %v732_v11 = vsel %vm2813_vm9, %v537_v5, %v731_v26  ;;  %v1016_v22 = vor.u32 %v1015_v9, %v1011_v8  ;;  %v545_v25 = vrot.slane %v541_v7, 4  ;;  %v738_v34 = vld [vmem:[#allocation2 + $0xb0] sm:$0x1]  ;;  %v3108_v9 = vld [vmem:[#allocation2 + $0x60] sm:$0xff]  }
  0x5c   : > { %v502_v30 = vsel %vm2790_vm7, %v494_v19, %v501_v48  ;;  %730 = vst.msk [vmem:[#allocation2 + $0xa0] sm:$0xf] %vm226_vm0, %v536_v10  ;;  %733 = vst [vmem:[#allocation2 + $0xa4] sm:$0x1] %v732_v11  ;;  %v311_v19 = vld [vmem:[%s2782_s23 + $0x74] sm:$0xf]  ;;  %v544_v48 = vor.u32 %v542_v14, %v541_v7 }
  0x5d   : > { %716 = vst.msk [vmem:[#allocation2 + $0x88] sm:$0xf] %vm226_vm0, %v502_v30  ;;  %v559_v30 = vshll.u32 %v310_v13, 16  ;;  %v1182_v39 = vrot.slane %v3033_v56, 1  ;;  %v1025_v40 = vshll.u32 %v3066_v24, 16  ;;  %v567_v50 = vshll.u32 %v311_v19, 16 }
  0x5e   : > { %1371 = vrot.lane.b32.xlu0 %v2929_v3, %s2675_s27  ;;  %v718_v3 = vsel %vm2813_vm9, %v503_v21, %v717_v12  ;;  %v556_v12 = vshrl.u32 %v310_v13, 16  ;;  %v549_v21 = vrot.slane %v547_v15, 7  ;;  %v735_v32 = vsel %vm2797_vm8, %v544_v48, %v734_v18  ;;  %v2633_v44 = vld [vmem:[#allocation2 + $0x5c] ss:$0 sps:$4 sm:$0x11]  }
  0x5f   : > { %1373 = vrot.lane.b32.xlu1 %v2958_v33, %s2675_s27  ;;  %719 = vst [vmem:[#allocation2 + $0x8c] sm:$0x1] %v718_v3  ;;  %v564_v3 = vshrl.u32 %v311_v19, 16  ;;  %736 = vst [vmem:[#allocation2 + $0xa8] sm:$0xf] %v735_v32  ;;  %v1023_v55 = vshrl.u32 %v3066_v24, 16 }
  0x60   : > { %v558_v27 = vrot.slane %v556_v12, 7  ;;  %v552_v31 = vor.u32 %v550_v17, %v549_v21  ;;  %v554_v35 = vrot.slane %v549_v21, 4  ;;  %v745_v53 = vld [vmem:[#allocation2 + $0xbc] sm:$0x1]  ;;  %v1027_v41 = vrot.slane %v1025_v40, 1 }
  0x61   : > { %v566_v43 = vrot.slane %v564_v3, 7  ;;  %v1030_v58 = vshll.u32 %v2633_v44, 16  ;;  %v312_v63 = vld [vmem:[%s2782_s23 + $0x78] sm:$0xf]  ;;  %v313_v26 = vld [vmem:[%s2782_s23 + $0x7c] sm:$0xf] }
  0x62   : > { %1418 = vrot.lane.b32.xlu0 %v2977_v49, %s2679_s10  ;;  %v561_v37 = vor.u32 %v559_v30, %v558_v27  ;;  %v553_v42 = vsel %vm2790_vm7, %v545_v25, %v552_v31  ;;  %v739_v45 = vsel %vm2813_vm9, %v554_v35, %v738_v34  ;;  %v562_v47 = vrot.slane %v558_v27, 4  ;;  %v748_v14 = vld [vmem:[#allocation2 + $0xc0] sm:$0xf]  ;;  %v752_v12 = vld [vmem:[#allocation2 + $0xc8] sm:$0x1]  ;;  %v3126_v30 = vld [vmem:[#allocation2 + $0x6c] sm:$0xff]  }
  0x63   : > { %1420 = vrot.lane.b32.xlu1 %v3012_v29, %s2679_s10  ;;  %737 = vst.msk [vmem:[#allocation2 + $0xac] sm:$0xf] %vm226_vm0, %v553_v42  ;;  %740 = vst [vmem:[#allocation2 + $0xb0] sm:$0x1] %v739_v45  ;;  %v569_v52 = vor.u32 %v567_v50, %v566_v43  ;;  %v1028_v61 = vor.u32 %v1027_v41, %v1023_v55  ;;  %v1032_v62 = vrot.slane %v1030_v58, 1  ;;  %v573_v1 = vshrl.u32 %v312_v63, 16 }
  0x64   : > { %v742_v51 = vsel %vm2797_vm8, %v561_v37, %v741_v38  ;;  %v581_v4 = vshrl.u32 %v313_v26, 16  ;;  %v576_v5 = vshll.u32 %v312_v63, 16  ;;  %v1184_v6 = vrot.slane %v3066_v24, 1  ;;  %v2637_v32 = vld [vmem:[#allocation2 + $0x74] ss:$0 sps:$4 sm:$0x11]  }
  0x65   : > { %743 = vst [vmem:[#allocation2 + $0xb4] sm:$0xf] %v742_v51  ;;  %v570_v59 = vsel %vm2790_vm7, %v562_v47, %v569_v52  ;;  %v1033_v0 = vsel %vm937_vm5, %v1028_v61, %v1032_v62  ;;  %v584_v8 = vshll.u32 %v313_v26, 16  ;;  %v1037_v48 = vshll.u32 %v3108_v9, 16  ;;  %v3149_v52 = vld [vmem:[#allocation2 + $0x78] sm:$0xff]   ;;  %v2659_v26 = vld [vmem:[#allocation2] sm:$0xff]  }
  0x66   : > { %1453 = vrot.lane.b32.xlu0 %v2983_v54, %s2677_s8  ;;  %744 = vst.msk [vmem:[#allocation2 + $0xb8] sm:$0xf] %vm226_vm0, %v570_v59  ;;  %v583_v7 = vrot.slane %v581_v4, 7  ;;  %v1035_v23 = vshrl.u32 %v3108_v9, 16  ;;  %v1187_v3 = vrot.slane %v3108_v9, 1  ;;  %v1049_v34 = vshll.u32 %v3126_v30, 16 }
  0x67   : > { %1138 = vrot.lane.b32.xlu1 %v2977_v49, %s2673_s25  ;;  %v1018_v49 = vshll.u32 %v3033_v56, 16  ;;  %v571_v56 = vrot.slane %v566_v43, 4  ;;  %v1047_v35 = vshrl.u32 %v3126_v30, 16  ;;  %v1054_v38 = vshll.u32 %v2637_v32, 16 }
  0x68   : > { %v586_v13 = vor.u32 %v584_v8, %v583_v7  ;;  %v588_v17 = vrot.slane %v583_v7, 4  ;;  %v1051_v37 = vrot.slane %v1049_v34, 1  ;;  %v1190_v43 = vrot.slane %v3126_v30, 1 }
  0x69   : > { %v1020_v20 = vrot.slane %v1018_v49, 1  ;;  %v1185_v49 = vrot.slane %v2633_v44, 1  ;;  %v1056_v42 = vrot.slane %v1054_v38, 1  ;;  %v1191_v50 = vrot.slane %v2637_v32, 1 }
  0x6a   : > { %1455 = vrot.lane.b32.xlu0 %v3043_v60, %s2677_s8  ;;  %v753_v21 = vsel %vm2813_vm9, %v588_v17, %v752_v12  ;;  %v1052_v40 = vor.u32 %v1051_v37, %v1047_v35  ;;  %v1061_v41 = vshll.u32 %v3149_v52, 16  ;;  %vm1481_vm11 = vcmask 31744  }
  0x6b   : > { %1140 = vrot.lane.b32.xlu1 %v3012_v29, %s2673_s25  ;;  %v1021_v2 = vsel %vm937_vm5, %v1016_v22, %v1020_v20  ;;  %v1186_v18 = vsel %vm1162_vm6, %v1184_v6, %v1185_v49  ;;  %v2635_v20 = vld [vmem:[#allocation2 + $0x68] ss:$0 sps:$4 sm:$0x11]   ;;  %754 = vst [vmem:[#allocation2 + $0xc8] sm:$0x1] %v753_v21  ;;  %v1039_v22 = vrot.slane %v1037_v48, 1  ;;  %v1192_v55 = vsel %vm1162_vm6, %v1190_v43, %v1191_v50 }
  0x6c   : > { %v1042_v16 = vshll.u32 %v2635_v20, 16  ;;  %v1188_v31 = vrot.slane %v2635_v20, 1  ;;  %v1057_v47 = vsel %vm937_vm5, %v1052_v40, %v1056_v42  ;;  %v1063_v61 = vrot.slane %v1061_v41, 1  ;;  %v3202_v50 = vld [vmem:[#allocation2 + $0x90] sm:$0xff]  }
  0x6d   : > { %v1040_v25 = vor.u32 %v1039_v22, %v1035_v23  ;;  %vm1514_vm12 = vcmask 64512   ;;  %vm1547_vm13 = vcmask 97280   ;;  %vm1580_vm14 = vcmask 130048  }
  0x6e   : > { %1219 = vrot.lane.b32.xlu0 %v2983_v54, %s2672_s24  ;;  %v1181_v54 = vrot.slane %v3021_v36, 1  ;;  %v1044_v27 = vrot.slane %v1042_v16, 1  ;;  %vm1613_vm15 = vcmask 162816   ;;  %vm1679_vm1 = vcmask 228352  }
  0x6f   : > { %1221 = vrot.lane.b32.xlu1 %v3043_v60, %s2672_s24  ;;  %vm1712_vm2 = vcmask 261120   ;;  %vm1772_vm3 = vcmask 293888  }
  0x70   : > { %v1183_v57 = vsel %vm1162_vm6, %v1181_v54, %v1182_v39  ;;  %v1045_v46 = vsel %vm937_vm5, %v1040_v25, %v1044_v27  ;;  %v1189_v54 = vsel %vm1162_vm6, %v1187_v3, %v1188_v31 }
  0x72   : > { %1256 = vrot.lane.b32.xlu0 %v2958_v33, %s2674_s26 }
  0x73   : > { %1258 = vrot.lane.b32.xlu1 %v3021_v36, %s2674_s26 }
  0x76   : > { %1303 = vrot.lane.b32.xlu0 %v3012_v29, %s2678_s9  ;;  %v746_v29 = vsel %vm2813_vm9, %v571_v56, %v745_v53 }
  0x77   : > { %1305 = vrot.lane.b32.xlu1 %v1021_v2, %s2678_s9  ;;  %747 = vst [vmem:[#allocation2 + $0xbc] sm:$0x1] %v746_v29  ;;  %v1059_v29 = vshrl.u32 %v3149_v52, 16 }
  0x79   : > { %v1064_v4 = vor.u32 %v1063_v61, %v1059_v29 }
  0x7a   : > { %1338 = vrot.lane.b32.xlu0 %v3043_v60, %s2676_s30  ;;  %v575_v60 = vrot.slane %v573_v1, 7 }
  0x7b   : > { %1340 = vrot.lane.b32.xlu1 %v1183_v57, %s2676_s30 }
  0x7c   : > { %v578_v10 = vor.u32 %v576_v5, %v575_v60  ;;  %v579_v11 = vrot.slane %v575_v60, 4  ;;  %v3161_v5 = vld [vmem:[#allocation2 + $0x84] sm:$0xff]  }
  0x7d   : > { %v1071_v25 = vshrl.u32 %v3161_v5, 16 }
  0x7e   : > { %1375 = vrot.lane.b32.xlu0 %v3021_v36, %s2675_s27  ;;  %v749_v15 = vsel %vm2797_vm8, %v578_v10, %v748_v14  ;;  %v587_v19 = vsel %vm2790_vm7, %v579_v11, %v586_v13  ;;  %v1193_v11 = vrot.slane %v3149_v52, 1 }
  0x7f   : > { %1377 = vrot.lane.b32.xlu1 %v3066_v24, %s2675_s27  ;;  %750 = vst [vmem:[#allocation2 + $0xc0] sm:$0xf] %v749_v15  ;;  %751 = vst.msk [vmem:[#allocation2 + $0xc4] sm:$0xf] %vm226_vm0, %v587_v19  ;;  %vm1646_vm0 = vcmask 195584   ;;  %v1073_v19 = vshll.u32 %v3161_v5, 16 }
  0x81   : > { %v1075_v27 = vrot.slane %v1073_v19, 1 }
  0x82   : > { %1422 = vrot.lane.b32.xlu0 %v1021_v2, %s2679_s10 }
  0x83   : > { %1424 = vrot.lane.b32.xlu1 %v1033_v0, %s2679_s10  ;;  %v1076_v37 = vor.u32 %v1075_v27, %v1071_v25 }
  0x86   : > { %1457 = vrot.lane.b32.xlu0 %v1183_v57, %s2677_s8 }
  0x87   : > { %1142 = vrot.lane.b32.xlu1 %v1021_v2, %s2673_s25 }
  0x8a   : > { %1459 = vrot.lane.b32.xlu0 %v1186_v18, %s2677_s8 }
  0x8b   : > { %1144 = vrot.lane.b32.xlu1 %v1033_v0, %s2673_s25 }
  0x8e   : > { %1223 = vrot.lane.b32.xlu0 %v1183_v57, %s2672_s24  ;;  %v2641_v57 = vld [vmem:[#allocation2 + $0x80] ss:$0 sps:$4 sm:$0x11]  }
  0x8f   : > { %1225 = vrot.lane.b32.xlu1 %v1186_v18, %s2672_s24  ;;  %v1066_v62 = vshll.u32 %v2641_v57, 16  ;;  %v1194_v13 = vrot.slane %v2641_v57, 1  ;;  %v1085_v57 = vshll.u32 %v3202_v50, 16 }
  0x91   : > { %v1068_v60 = vrot.slane %v1066_v62, 1  ;;  %v1195_v16 = vsel %vm1162_vm6, %v1193_v11, %v1194_v13  ;;  %v1087_v29 = vrot.slane %v1085_v57, 1 }
  0x92   : > { %1260 = vrot.lane.b32.xlu0 %v3066_v24, %s2674_s26 }
  0x93   : > { %1262 = vrot.lane.b32.xlu1 %v3108_v9, %s2674_s26  ;;  %v1069_v17 = vsel %vm937_vm5, %v1064_v4, %v1068_v60  ;;  %v2660_v60 = vld [vmem:[#allocation2 + $0x18] sm:$0xff]  }
  0x96   : > { %1307 = vrot.lane.b32.xlu0 %v1033_v0, %s2678_s9 }
  0x97   : > { %1309 = vrot.lane.b32.xlu1 %v1045_v46, %s2678_s9  ;;  %v1212_v2 = vpop.permute.xlu1 %1211 }
  0x99   : > { %v1131_v39 = vpop.permute.xlu0 %1130 }
  0x9a   : > { %1342 = vrot.lane.b32.xlu0 %v1186_v18, %s2676_s30  ;;  %v1483_v0 = vsel %vm1481_vm11, %v2659_v26, %v1131_v39  ;;  %v2644_v18 = vld [vmem:[#allocation2 + $0x8c] ss:$0 sps:$4 sm:$0x11]  }
  0x9b   : > { %1344 = vrot.lane.b32.xlu1 %v1189_v54, %s2676_s30  ;;  %v1516_v8 = vsel %vm1514_vm12, %v1483_v0, %v1212_v2 }
  0x9e   : > { %1379 = vrot.lane.b32.xlu0 %v3108_v9, %s2675_s27  ;;  %v1251_v44 = vpop.permute.xlu1 %1250 }
  0x9f   : > { %1381 = vrot.lane.b32.xlu1 %v3126_v30, %s2675_s27 }
  0xa0   : > { %v1249_v45 = vpop.permute.xlu0 %1248 }
  0xa2   : > { %1426 = vrot.lane.b32.xlu0 %v1045_v46, %s2679_s10 }
  0xa3   : > { %1428 = vrot.lane.b32.xlu1 %v1057_v47, %s2679_s10 }
  0xa4   : > { %v1368_v51 = vpop.permute.xlu0 %1367 }
  0xa5   : > { %v1370_v53 = vpop.permute.xlu1 %1369 }
  0xa6   : > { %1461 = vrot.lane.b32.xlu0 %v1189_v54, %s2677_s8 }
  0xa7   : > { %1146 = vrot.lane.b32.xlu1 %v1045_v46, %s2673_s25  ;;  %v1078_v46 = vshll.u32 %v2644_v18, 16 }
  0xa8   : > { %v1331_v56 = vpop.permute.xlu0 %1330 }
  0xa9   : > { %v1214_v58 = vpop.permute.xlu1 %1213  ;;  %v1080_v38 = vrot.slane %v1078_v46, 1 }
  0xaa   : > { %1463 = vrot.lane.b32.xlu0 %v1192_v55, %s2677_s8 }
  0xab   : > { %1148 = vrot.lane.b32.xlu1 %v1057_v47, %s2673_s25  ;;  %v1081_v42 = vsel %vm937_vm5, %v1076_v37, %v1080_v38 }
  0xac   : > { %v1450_v59 = vpop.permute.xlu0 %1449 }
  0xad   : > { %v1333_v63 = vpop.permute.xlu1 %1332 }
  0xae   : > { %1227 = vrot.lane.b32.xlu0 %v1189_v54, %s2672_s24 }
  0xaf   : > { %1229 = vrot.lane.b32.xlu1 %v1192_v55, %s2672_s24 }
  0xb0   : > { %v1133_v1 = vpop.permute.xlu0 %1132 }
  0xb1   : > { %v1298_v6 = vpop.permute.xlu1 %1297  ;;  %v1485_v49 = vsel %vm1481_vm11, %v2844_v28, %v1133_v1  ;;  %v1549_v28 = vsel %vm1547_vm13, %v1516_v8, %v1249_v45  ;;  %v1196_v45 = vrot.slane %v3161_v5, 1  ;;  %v3213_v1 = vld [vmem:[#allocation2 + $0x9c] sm:$0xff]  }
  0xb2   : > { %v1518_v7 = vsel %vm1514_vm12, %v1485_v49, %v1214_v58  ;;  %1264 = vrot.lane.b32.xlu0 %v3126_v30, %s2674_s26 }
  0xb3   : > { %v1551_v10 = vsel %vm1547_vm13, %v1518_v7, %v1251_v44  ;;  %1266 = vrot.lane.b32.xlu1 %v3149_v52, %s2674_s26  ;;  %v1199_v7 = vrot.slane %v3202_v50, 1 }
  0xb4   : > { %v1584_v14 = vsel %vm1580_vm14, %v1551_v10, %v1298_v6  ;;  %v1296_v15 = vpop.permute.xlu0 %1295 }
  0xb5   : > { %v1417_v12 = vpop.permute.xlu1 %1416  ;;  %v1582_v20 = vsel %vm1580_vm14, %v1549_v28, %v1296_v15  ;;  %v1617_v48 = vsel %vm1613_vm15, %v1584_v14, %v1333_v63  ;;  %v2648_v28 = vld [vmem:[#allocation2 + $0xa4] ss:$0 sps:$4 sm:$0x11]   ;;  %v1097_v14 = vshll.u32 %v3213_v1, 16 }
  0xb6   : > { %v1615_v21 = vsel %vm1613_vm15, %v1582_v20, %v1331_v56  ;;  %1311 = vrot.lane.b32.xlu0 %v1057_v47, %s2678_s9  ;;  %v1650_v3 = vsel %vm1646_vm0, %v1617_v48, %v1370_v53  ;;  %v1197_v47 = vrot.slane %v2644_v18, 1  ;;  %v2646_v56 = vld [vmem:[#allocation2 + $0x98] ss:$0 sps:$4 sm:$0x11]   ;;  %v2661_v18 = vld [vmem:[#allocation2 + $0x24] sm:$0xff]   ;;  %v1102_v46 = vshll.u32 %v2648_v28, 16 }
  0xb7   : > { %1313 = vrot.lane.b32.xlu1 %v1069_v17, %s2678_s9  ;;  %v1648_v23 = vsel %vm1646_vm0, %v1615_v21, %v1368_v51  ;;  %v1683_v54 = vsel %vm1679_vm1, %v1650_v3, %v1417_v12  ;;  %v1090_v61 = vshll.u32 %v2646_v56, 16  ;;  %v1200_v8 = vrot.slane %v2646_v56, 1 }
  0xb8   : > { %v1415_v22 = vpop.permute.xlu0 %1414  ;;  %v1198_v53 = vsel %vm1162_vm6, %v1196_v45, %v1197_v47  ;;  %v1099_v27 = vrot.slane %v1097_v14, 1  ;;  %v1202_v47 = vrot.slane %v3213_v1, 1 }
  0xb9   : > { %v1135_v31 = vpop.permute.xlu1 %1134  ;;  %v1681_v32 = vsel %vm1679_vm1, %v1648_v23, %v1415_v22  ;;  %v1092_v0 = vrot.slane %v1090_v61, 1  ;;  %v1201_v21 = vsel %vm1162_vm6, %v1199_v7, %v1200_v8  ;;  %v1095_v23 = vshrl.u32 %v3213_v1, 16  ;;  %v2662_v7 = vld [vmem:[#allocation2 + $0x30] sm:$0xff]  }
  0xba   : > { %1346 = vrot.lane.b32.xlu0 %v1192_v55, %s2676_s30  ;;  %v1714_v34 = vsel %vm1712_vm2, %v1681_v32, %v1450_v59  ;;  %v1083_v59 = vshrl.u32 %v3202_v50, 16  ;;  %v1487_v6 = vsel %vm1481_vm11, %v2660_v60, %v1135_v31 }
  0xbb   : > { %1348 = vrot.lane.b32.xlu1 %v1195_v16, %s2676_s30  ;;  %2532 = vmatprep.mubr.msk.bf16.mxu0 %vm1772_vm3, %v1714_v34  ;;  %v1100_v38 = vor.u32 %v1099_v27, %v1095_v23 }
  0xbc   : > { %v1452_v35 = vpop.permute.xlu0 %1451  ;;  %v1088_v26 = vor.u32 %v1087_v29, %v1083_v59 }
  0xbd   : > { %v1137_v2 = vpop.permute.xlu1 %1136  ;;  %v1716_v39 = vsel %vm1712_vm2, %v1683_v54, %v1452_v35 }
  0xbe   : > { %1383 = vrot.lane.b32.xlu0 %v3149_v52, %s2675_s27  ;;  %2533 = vmatmul.mubr.msk.bf16.vlgmr.msra.gmra.mrb[0].mxu0 %vm1772_vm3, %v1716_v39  ;;  %v1093_v13 = vsel %vm937_vm5, %v1088_v26, %v1092_v0  ;;  %v1489_v19 = vsel %vm1481_vm11, %v2661_v18, %v1137_v2  ;;  %v1104_v2 = vrot.slane %v1102_v46, 1 }
  0xbf   : > { %1385 = vrot.lane.b32.xlu1 %v3161_v5, %s2675_s27 }
  0xc0   : > { %v1216_v40 = vpop.permute.xlu0 %1215 }
  0xc1   : > { %v1218_v44 = vpop.permute.xlu1 %1217  ;;  %v1520_v49 = vsel %vm1514_vm12, %v1487_v6, %v1216_v40  ;;  %v3265_v6 = vld [vmem:[#allocation2 + $0xb4] sm:$0xff]  }
  0xc2   : > { %1430 = vrot.lane.b32.xlu0 %v1069_v17, %s2679_s10  ;;  %v1522_v20 = vsel %vm1514_vm12, %v1489_v19, %v1218_v44  ;;  %v1105_v44 = vsel %vm937_vm5, %v1100_v38, %v1104_v2  ;;  %v1121_v18 = vshll.u32 %v3265_v6, 16 }
  0xc3   : > { %1432 = vrot.lane.b32.xlu1 %v1081_v42, %s2679_s10 }
  0xc4   : > { %v1253_v43 = vpop.permute.xlu0 %1252 }
  0xc5   : > { %v1255_v51 = vpop.permute.xlu1 %1254  ;;  %v1553_v10 = vsel %vm1547_vm13, %v1520_v49, %v1253_v43  ;;  %v1203_v43 = vrot.slane %v2648_v28, 1 }
  0xc6   : > { %1465 = vrot.lane.b32.xlu0 %v1195_v16, %s2677_s8  ;;  %v1555_v22 = vsel %vm1547_vm13, %v1522_v20, %v1255_v51 }
  0xc7   : > { %1150 = vrot.lane.b32.xlu1 %v1069_v17, %s2673_s25  ;;  %v1204_v56 = vsel %vm1162_vm6, %v1202_v47, %v1203_v43  ;;  %v1208_v43 = vrot.slane %v3265_v6, 1 }
  0xc8   : > { %v1300_v55 = vpop.permute.xlu0 %1299 }
  0xc9   : > { %v1302_v41 = vpop.permute.xlu1 %1301  ;;  %v1586_v15 = vsel %vm1580_vm14, %v1553_v10, %v1300_v55 }
  0xca   : > { %1467 = vrot.lane.b32.xlu0 %v1198_v53, %s2677_s8  ;;  %v1588_v3 = vsel %vm1580_vm14, %v1555_v22, %v1302_v41  ;;  %v2650_v41 = vld [vmem:[#allocation2 + $0xb0] ss:$0 sps:$4 sm:$0x11]  }
  0xcb   : > { %1152 = vrot.lane.b32.xlu1 %v1081_v42, %s2673_s25 }
  0xcc   : > { %v1335_v58 = vpop.permute.xlu0 %1334 }
  0xcd   : > { %v1337_v62 = vpop.permute.xlu1 %1336  ;;  %v1619_v12 = vsel %vm1613_vm15, %v1586_v15, %v1335_v58 }
  0xce   : > { %1231 = vrot.lane.b32.xlu0 %v1195_v16, %s2672_s24  ;;  %v1621_v34 = vsel %vm1613_vm15, %v1588_v3, %v1337_v62 }
  0xcf   : > { %1233 = vrot.lane.b32.xlu1 %v1198_v53, %s2672_s24 }
  0xd0   : > { %v1372_v63 = vpop.permute.xlu0 %1371 }
  0xd1   : > { %v1374_v4 = vpop.permute.xlu1 %1373  ;;  %v1652_v48 = vsel %vm1646_vm0, %v1619_v12, %v1372_v63  ;;  %v1114_v63 = vshll.u32 %v2650_v41, 16 }
  0xd2   : > { %1268 = vrot.lane.b32.xlu0 %v3161_v5, %s2674_s26  ;;  %v1654_v54 = vsel %vm1646_vm0, %v1621_v34, %v1374_v4 }
  0xd3   : > { %1270 = vrot.lane.b32.xlu1 %v3202_v50, %s2674_s26  ;;  %v1116_v60 = vrot.slane %v1114_v63, 1 }
  0xd4   : > { %v1419_v11 = vpop.permute.xlu0 %1418 }
  0xd5   : > { %v1421_v17 = vpop.permute.xlu1 %1420  ;;  %v1685_v16 = vsel %vm1679_vm1, %v1652_v48, %v1419_v11 }
  0xd6   : > { %1315 = vrot.lane.b32.xlu0 %v1081_v42, %s2678_s9  ;;  %v1687_v35 = vsel %vm1679_vm1, %v1654_v54, %v1421_v17  ;;  %v2652_v17 = vld [vmem:[#allocation2 + $0xbc] ss:$0 sps:$4 sm:$0x11]  }
  0xd7   : > { %1317 = vrot.lane.b32.xlu1 %v1093_v13, %s2678_s9  ;;  %v1126_v3 = vshll.u32 %v2652_v17, 16 }
  0xd8   : > { %v1454_v25 = vpop.permute.xlu0 %1453 }
  0xd9   : > { %v1139_v31 = vpop.permute.xlu1 %1138  ;;  %v1718_v32 = vsel %vm1712_vm2, %v1685_v16, %v1454_v25  ;;  %v1119_v16 = vshrl.u32 %v3265_v6, 16 }
  0xda   : > { %1350 = vrot.lane.b32.xlu0 %v1198_v53, %s2676_s30  ;;  %2536 = vmatprep.mubr.msk.bf16.mxu0 %vm1772_vm3, %v1718_v32  ;;  %v3254_v53 = vld [vmem:[#allocation2 + $0xa8] sm:$0xff]   ;;  %v1491_v8 = vsel %vm1481_vm11, %v2662_v7, %v1139_v31 }
  0xdb   : > { %1352 = vrot.lane.b32.xlu1 %v1201_v21, %s2676_s30  ;;  %v1109_v58 = vshll.u32 %v3254_v53, 16  ;;  %v1107_v61 = vshrl.u32 %v3254_v53, 16  ;;  %v1205_v11 = vrot.slane %v3254_v53, 1 }
  0xdc   : > { %v1456_v37 = vpop.permute.xlu0 %1455 }
  0xdd   : > { %v1141_v39 = vpop.permute.xlu1 %1140  ;;  %v1720_v40 = vsel %vm1712_vm2, %v1687_v35, %v1456_v37  ;;  %v1111_v62 = vrot.slane %v1109_v58, 1 }
  0xde   : > { %1387 = vrot.lane.b32.xlu0 %v3202_v50, %s2675_s27  ;;  %2537 = vmatmul.mubr.msk.bf16.gmra.mrb[4].mxu0 %vm1772_vm3, %v1720_v40  ;;  %v1493_v20 = vsel %vm1481_vm11, %v2958_v33, %v1141_v39  ;;  %v1123_v33 = vrot.slane %v1121_v18, 1  ;;  %v1128_v39 = vrot.slane %v1126_v3, 1 }
  0xdf   : > { %1389 = vrot.lane.b32.xlu1 %v3213_v1, %s2675_s27  ;;  %v1112_v4 = vor.u32 %v1111_v62, %v1107_v61 }
  0xe0   : > { %v1220_v42 = vpop.permute.xlu0 %1219  ;;  %v1124_v2 = vor.u32 %v1123_v33, %v1119_v16 }
  0xe1   : > { %v1222_v45 = vpop.permute.xlu1 %1221  ;;  %v1524_v10 = vsel %vm1514_vm12, %v1491_v8, %v1220_v42  ;;  %v1117_v15 = vsel %vm937_vm5, %v1112_v4, %v1116_v60  ;;  %v2655_v8 = vld [vmem:[#allocation2 + $0xcc] sm:$0xff]  }
  0xe2   : > { %1434 = vrot.lane.b32.xlu0 %v1093_v13, %s2679_s10 }
  0xe3   : > { %1436 = vrot.lane.b32.xlu1 %v1105_v44, %s2679_s10 }
  0xe4   : > { %v1257_v51 = vpop.permute.xlu0 %1256 }
  0xe5   : > { %v1259_v55 = vpop.permute.xlu1 %1258  ;;  %v1557_v28 = vsel %vm1547_vm13, %v1524_v10, %v1257_v51  ;;  %v1209_v51 = vrot.slane %v2652_v17, 1 }
  0xe6   : > { %1469 = vrot.lane.b32.xlu0 %v1201_v21, %s2677_s8 }
  0xe7   : > { %1154 = vrot.lane.b32.xlu1 %v1093_v13, %s2673_s25  ;;  %v1206_v13 = vrot.slane %v2650_v41, 1  ;;  %v1210_v41 = vsel %vm1162_vm6, %v1208_v43, %v1209_v51  ;;  %v1446_v51 = vrot.slane %v2655_v8, 1 }
  0xe8   : > { %v1304_v57 = vpop.permute.xlu0 %1303 }
  0xe9   : > { %v1306_v59 = vpop.permute.xlu1 %1305  ;;  %v1590_v19 = vsel %vm1580_vm14, %v1557_v28, %v1304_v57  ;;  %v1207_v22 = vsel %vm1162_vm6, %v1205_v11, %v1206_v13 }
  0xea   : > { %1471 = vrot.lane.b32.xlu0 %v1204_v56, %s2677_s8 }
  0xeb   : > { %1156 = vrot.lane.b32.xlu1 %v1105_v44, %s2673_s25 }
  0xec   : > { %v1339_v29 = vpop.permute.xlu0 %1338 }
  0xed   : > { %v1341_v26 = vpop.permute.xlu1 %1340  ;;  %v1623_v48 = vsel %vm1613_vm15, %v1590_v19, %v1339_v29  ;;  %v2656_v19 = vld [vmem:[#allocation2 + $0xd4] ss:$0 sps:$4 sm:$0x11]  }
  0xee   : > { %1235 = vrot.lane.b32.xlu0 %v1201_v21, %s2672_s24  ;;  %v1526_v21 = vsel %vm1514_vm12, %v1493_v20, %v1222_v45  ;;  %v1129_v45 = vsel %vm937_vm5, %v1124_v2, %v1128_v39 }
  0xef   : > { %1237 = vrot.lane.b32.xlu1 %v1204_v56, %s2672_s24  ;;  %v1559_v25 = vsel %vm1547_vm13, %v1526_v21, %v1259_v55 }
  0xf0   : > { %v1376_v0 = vpop.permute.xlu0 %1375  ;;  %v1592_v31 = vsel %vm1580_vm14, %v1559_v25, %v1306_v59  ;;  %v2654_v59 = vld [vmem:[#allocation2 + $0xc8] ss:$0 sps:$4 sm:$0x11]  }
  0xf1   : > { %v1378_v49 = vpop.permute.xlu1 %1377  ;;  %v1656_v23 = vsel %vm1646_vm0, %v1623_v48, %v1376_v0  ;;  %v1625_v54 = vsel %vm1613_vm15, %v1592_v31, %v1341_v26  ;;  %v1291_v0 = vshll.u32 %v2654_v59, 16  ;;  %v1410_v31 = vshll.u32 %v2656_v19, 16 }
  0xf2   : > { %1272 = vrot.lane.b32.xlu0 %v3213_v1, %s2674_s26  ;;  %v1658_v35 = vsel %vm1646_vm0, %v1625_v54, %v1378_v49 }
  0xf3   : > { %1274 = vrot.lane.b32.xlu1 %v3254_v53, %s2674_s26  ;;  %v1293_v7 = vrot.slane %v1291_v0, 1 }
  0xf4   : > { %v1423_v14 = vpop.permute.xlu0 %1422 }
  0xf5   : > { %v1425_v12 = vpop.permute.xlu1 %1424  ;;  %v1689_v27 = vsel %vm1679_vm1, %v1656_v23, %v1423_v14  ;;  %v1328_v14 = vrot.slane %v2654_v59, 1 }
  0xf6   : > { %1319 = vrot.lane.b32.xlu0 %v1105_v44, %s2678_s9  ;;  %v1691_v37 = vsel %vm1679_vm1, %v1658_v35, %v1425_v12  ;;  %v1405_v12 = vshll.u32 %v2655_v8, 16 }
  0xf7   : > { %1321 = vrot.lane.b32.xlu1 %v1117_v15, %s2678_s9 }
  0xf8   : > { %v1458_v46 = vpop.permute.xlu0 %1457  ;;  %v1407_v3 = vrot.slane %v1405_v12, 1 }
  0xf9   : > { %v1143_v32 = vpop.permute.xlu1 %1142  ;;  %v1722_v34 = vsel %vm1712_vm2, %v1689_v27, %v1458_v46  ;;  %v1403_v27 = vshrl.u32 %v2655_v8, 16 }
  0xfa   : > { %1354 = vrot.lane.b32.xlu0 %v1204_v56, %s2676_s30  ;;  %2540 = vmatprep.mubr.msk.bf16.mxu0 %vm1772_vm3, %v1722_v34  ;;  %v3307_v56 = vld [vmem:[#allocation2 + $0xc0] sm:$0xff]   ;;  %v1495_v11 = vsel %vm1481_vm11, %v3021_v36, %v1143_v32  ;;  %v2658_v32 = vld [vmem:[%s3610_s3 + $0x8] sm:$0xff]  }
  0xfb   : > { %1356 = vrot.lane.b32.xlu1 %v1207_v22, %s2676_s30  ;;  %v1286_v29 = vshll.u32 %v3307_v56, 16  ;;  %v1284_v63 = vshrl.u32 %v3307_v56, 16  ;;  %v1327_v28 = vrot.slane %v3307_v56, 1  ;;  %v2657_v36 = vld [vmem:[%s3610_s3] sm:$0xff]  }
  0xfc   : > { %v1460_v38 = vpop.permute.xlu0 %1459  ;;  %2564 = vmatprep.subr.bf16.mxu1 %v2657_v36 }
  0xfd   : > { %v1145_v40 = vpop.permute.xlu1 %1144  ;;  %v1724_v42 = vsel %vm1712_vm2, %v1691_v37, %v1460_v38  ;;  %v1288_v26 = vrot.slane %v1286_v29, 1  ;;  %v1329_v25 = vsel %vm1162_vm6, %v1327_v28, %v1328_v14  ;;  %2565 = vmatpush3.bf16.msra.mxu1 %v2657_v36 }
  0xfe   : > { %1391 = vrot.lane.b32.xlu0 %v3254_v53, %s2675_s27  ;;  %2541 = vmatmul.mubr.msk.bf16.gmra.mrb[8].mxu0 %vm1772_vm3, %v1724_v42  ;;  %v1497_v21 = vsel %vm1481_vm11, %v3066_v24, %v1145_v40  ;;  %v1408_v40 = vor.u32 %v1407_v3, %v1403_v27  ;;  %v1412_v42 = vrot.slane %v1410_v31, 1 }
  0xff   : > { %1393 = vrot.lane.b32.xlu1 %v3265_v6, %s2675_s27  ;;  %v1289_v49 = vor.u32 %v1288_v26, %v1284_v63  ;;  %2566 = vmatprep.subr.bf16.mxu1 %v2658_v32 }
 0x100   : > { %v1224_v44 = vpop.permute.xlu0 %1223  ;;  %v1413_v43 = vsel %vm937_vm5, %v1408_v40, %v1412_v42 }
 0x101   : > { %v1226_v47 = vpop.permute.xlu1 %1225  ;;  %v1528_v13 = vsel %vm1514_vm12, %v1495_v11, %v1224_v44  ;;  %v1294_v18 = vsel %vm937_vm5, %v1289_v49, %v1293_v7  ;;  %2567 = vmatpush3.bf16.msra.mxu1 %v2658_v32 }
 0x102   : > { %1438 = vrot.lane.b32.xlu0 %v1117_v15, %s2679_s10 }
 0x103   : > { %1440 = vrot.lane.b32.xlu1 %v1129_v45, %s2679_s10 }
 0x104   : > { %v1261_v55 = vpop.permute.xlu0 %1260 }
 0x105   : > { %v1263_v57 = vpop.permute.xlu1 %1262 }
 0x106   : > { %1473 = vrot.lane.b32.xlu0 %v1207_v22, %s2677_s8 }
 0x107   : > { %1158 = vrot.lane.b32.xlu1 %v1117_v15, %s2673_s25  ;;  %v1561_v15 = vsel %vm1547_vm13, %v1528_v13, %v1261_v55  ;;  %v1447_v55 = vrot.slane %v2656_v19, 1 }
 0x108   : > { %v1308_v58 = vpop.permute.xlu0 %1307 }
 0x109   : > { %v1310_v61 = vpop.permute.xlu1 %1309  ;;  %v1594_v20 = vsel %vm1580_vm14, %v1561_v15, %v1308_v58  ;;  %v1448_v58 = vsel %vm1162_vm6, %v1446_v51, %v1447_v55 }
 0x10a   : > { %1475 = vrot.lane.b32.xlu0 %v1210_v41, %s2677_s8 }
 0x10b   : > { %1160 = vrot.lane.b32.xlu1 %v1129_v45, %s2673_s25 }
 0x10c   : > { %v1343_v62 = vpop.permute.xlu0 %1342 }
 0x10d   : > { %v1345_v4 = vpop.permute.xlu1 %1344  ;;  %v1627_v23 = vsel %vm1613_vm15, %v1594_v20, %v1343_v62 }
 0x10e   : > { %1239 = vrot.lane.b32.xlu0 %v1207_v22, %s2672_s24  ;;  %v1530_v22 = vsel %vm1514_vm12, %v1497_v21, %v1226_v47 }
 0x10f   : > { %1241 = vrot.lane.b32.xlu1 %v1210_v41, %s2672_s24  ;;  %v1563_v46 = vsel %vm1547_vm13, %v1530_v22, %v1263_v57 }
 0x110   : > { %v1380_v60 = vpop.permute.xlu0 %1379  ;;  %v1596_v34 = vsel %vm1580_vm14, %v1563_v46, %v1310_v61 }
 0x111   : > { %v1382_v10 = vpop.permute.xlu1 %1381  ;;  %v1660_v16 = vsel %vm1646_vm0, %v1627_v23, %v1380_v60  ;;  %v1629_v37 = vsel %vm1613_vm15, %v1596_v34, %v1345_v4 }
 0x112   : > { %1276 = vrot.lane.b32.xlu0 %v3265_v6, %s2674_s26  ;;  %v1662_v38 = vsel %vm1646_vm0, %v1629_v37, %v1382_v10 }
 0x113   : > { %1278 = vrot.lane.b32.xlu1 %v3307_v56, %s2674_s26  ;;  %s3502_s26 = scalar_lea.vmem %s3612_s5, %s2488_s21 }
 0x114   : > { %v1427_v17 = vpop.permute.xlu0 %1426 }
 0x115   : > { %v1429_v48 = vpop.permute.xlu1 %1428  ;;  %v1693_v33 = vsel %vm1679_vm1, %v1660_v16, %v1427_v17 }
 0x116   : > { %1323 = vrot.lane.b32.xlu0 %v1129_v45, %s2678_s9  ;;  %v1695_v2 = vsel %vm1679_vm1, %v1662_v38, %v1429_v48 }
 0x117   : > { %1325 = vrot.lane.b32.xlu1 %v1294_v18, %s2678_s9 }
 0x118   : > { %v1462_v24 = vpop.permute.xlu0 %1461 }
 0x119   : > { %v1147_v54 = vpop.permute.xlu1 %1146  ;;  %v1726_v35 = vsel %vm1712_vm2, %v1693_v33, %v1462_v24 }
 0x11a   : > { %1358 = vrot.lane.b32.xlu0 %v1210_v41, %s2676_s30  ;;  %2544 = vmatprep.mubr.msk.bf16.mxu0 %vm1772_vm3, %v1726_v35  ;;  %v1499_v0 = vsel %vm1481_vm11, %v3108_v9, %v1147_v54 }
 0x11b   : > { %1360 = vrot.lane.b32.xlu1 %v1329_v25, %s2676_s30 }
 0x11c   : > { %v1464_v39 = vpop.permute.xlu0 %1463 }
 0x11d   : > { %v1149_v44 = vpop.permute.xlu1 %1148  ;;  %v1728_v45 = vsel %vm1712_vm2, %v1695_v2, %v1464_v39 }
 0x11e   : > { %1395 = vrot.lane.b32.xlu0 %v3307_v56, %s2675_s27  ;;  %2545 = vmatmul.mubr.msk.bf16.gmra.mrb[12].mxu0 %vm1772_vm3, %v1728_v45  ;;  %v1501_v10 = vsel %vm1481_vm11, %v3126_v30, %v1149_v44 }
 0x11f   : > { %1397 = vrot.lane.b32.xlu1 %v2655_v8, %s2675_s27 }
 0x120   : > { %v1228_v47 = vpop.permute.xlu0 %1227 }
 0x121   : > { %v1230_v57 = vpop.permute.xlu1 %1229  ;;  %v1532_v4 = vsel %vm1514_vm12, %v1499_v0, %v1228_v47 }
 0x122   : > { %1442 = vrot.lane.b32.xlu0 %v1294_v18, %s2679_s10  ;;  %v1534_v13 = vsel %vm1514_vm12, %v1501_v10, %v1230_v57 }
 0x123   : > { %1444 = vrot.lane.b32.xlu1 %v1413_v43, %s2679_s10 }
 0x124   : > { %v1265_v41 = vpop.permute.xlu0 %1264 }
 0x125   : > { %v1267_v59 = vpop.permute.xlu1 %1266  ;;  %v1565_v60 = vsel %vm1547_vm13, %v1532_v4, %v1265_v41 }
 0x126   : > { %1477 = vrot.lane.b32.xlu0 %v1329_v25, %s2677_s8  ;;  %v1567_v14 = vsel %vm1547_vm13, %v1534_v13, %v1267_v59 }
 0x127   : > { %1479 = vrot.lane.b32.xlu1 %v1448_v58, %s2677_s8 }
 0x128   : > { %v1312_v56 = vpop.permute.xlu0 %1311 }
 0x129   : > { %v1314_v29 = vpop.permute.xlu1 %1313  ;;  %v1598_v7 = vsel %vm1580_vm14, %v1565_v60, %v1312_v56 }
 0x12a   : > { %v1600_v17 = vsel %vm1580_vm14, %v1567_v14, %v1314_v29 }
 0x12c   : > { %v1347_v61 = vpop.permute.xlu0 %1346 }
 0x12d   : > { %v1349_v62 = vpop.permute.xlu1 %1348  ;;  %v1631_v11 = vsel %vm1613_vm15, %v1598_v7, %v1347_v61 }
 0x12e   : > { %v1633_v12 = vsel %vm1613_vm15, %v1600_v17, %v1349_v62 }
 0x130   : > { %v1384_v63 = vpop.permute.xlu0 %1383 }
 0x131   : > { %v1386_v26 = vpop.permute.xlu1 %1385  ;;  %v1664_v28 = vsel %vm1646_vm0, %v1631_v11, %v1384_v63 }
 0x132   : > { %v1666_v30 = vsel %vm1646_vm0, %v1633_v12, %v1386_v26 }
 0x134   : > { %v1431_v49 = vpop.permute.xlu0 %1430 }
 0x135   : > { %v1433_v8 = vpop.permute.xlu1 %1432  ;;  %v1697_v9 = vsel %vm1679_vm1, %v1664_v28, %v1431_v49 }
 0x136   : > { %v1699_v36 = vsel %vm1679_vm1, %v1666_v30, %v1433_v8 }
 0x138   : > { %v1466_v15 = vpop.permute.xlu0 %1465 }
 0x139   : > { %v1151_v18 = vpop.permute.xlu1 %1150  ;;  %v1730_v19 = vsel %vm1712_vm2, %v1697_v9, %v1466_v15 }
 0x13a   : > { %2548 = vmatprep.mubr.msk.bf16.mxu0 %vm1772_vm3, %v1730_v19  ;;  %v1503_v32 = vsel %vm1481_vm11, %v3149_v52, %v1151_v18 }
 0x13c   : > { %v1468_v20 = vpop.permute.xlu0 %1467 }
 0x13d   : > { %v1153_v48 = vpop.permute.xlu1 %1152  ;;  %v1732_v21 = vsel %vm1712_vm2, %v1699_v36, %v1468_v20 }
 0x13e   : > { %2549 = vmatmul.mubr.msk.bf16.gmra.mrb[16].mxu0 %vm1772_vm3, %v1732_v21  ;;  %v1505_v2 = vsel %vm1481_vm11, %v3161_v5, %v1153_v48 }
 0x140   : > { %v1232_v23 = vpop.permute.xlu0 %1231 }
 0x141   : > { %v1234_v22 = vpop.permute.xlu1 %1233  ;;  %v1536_v34 = vsel %vm1514_vm12, %v1503_v32, %v1232_v23  ;;  %v3427_v32 = vld [vmem:[%s3609_s2] ss:$0 sm:$0xff] }
 0x142   : > { %v1538_v40 = vsel %vm1514_vm12, %v1505_v2, %v1234_v22 }
 0x144   : > { %v1269_v16 = vpop.permute.xlu0 %1268 }
 0x145   : > { %v1271_v25 = vpop.permute.xlu1 %1270  ;;  %v1569_v54 = vsel %vm1547_vm13, %v1536_v34, %v1269_v16 }
 0x146   : > { %v1571_v44 = vsel %vm1547_vm13, %v1538_v40, %v1271_v25 }
 0x148   : > { %v1316_v27 = vpop.permute.xlu0 %1315 }
 0x149   : > { %v1318_v46 = vpop.permute.xlu1 %1317  ;;  %v1602_v37 = vsel %vm1580_vm14, %v1569_v54, %v1316_v27 }
 0x14a   : > { %v1604_v47 = vsel %vm1580_vm14, %v1571_v44, %v1318_v46 }
 0x14c   : > { %v1351_v33 = vpop.permute.xlu0 %1350 }
 0x14d   : > { %v1353_v24 = vpop.permute.xlu1 %1352  ;;  %v1635_v39 = vsel %vm1613_vm15, %v1602_v37, %v1351_v33 }
 0x14e   : > { %v1637_v55 = vsel %vm1613_vm15, %v1604_v47, %v1353_v24 }
 0x150   : > { %v1388_v3 = vpop.permute.xlu0 %1387 }
 0x151   : > { %v1390_v31 = vpop.permute.xlu1 %1389  ;;  %v1668_v42 = vsel %vm1646_vm0, %v1635_v39, %v1388_v3 }
 0x152   : > { %v1670_v5 = vsel %vm1646_vm0, %v1637_v55, %v1390_v31 }
 0x154   : > { %v1435_v35 = vpop.permute.xlu0 %1434 }
 0x155   : > { %v1437_v38 = vpop.permute.xlu1 %1436  ;;  %v1701_v52 = vsel %vm1679_vm1, %v1668_v42, %v1435_v35 }
 0x156   : > { %v1703_v57 = vsel %vm1679_vm1, %v1670_v5, %v1437_v38 }
 0x158   : > { %v1470_v45 = vpop.permute.xlu0 %1469 }
 0x159   : > { %v1155_v43 = vpop.permute.xlu1 %1154  ;;  %v1734_v51 = vsel %vm1712_vm2, %v1701_v52, %v1470_v45 }
 0x15a   : > { %2552 = vmatprep.mubr.msk.bf16.mxu0 %vm1772_vm3, %v1734_v51  ;;  %v1507_v7 = vsel %vm1481_vm11, %v3202_v50, %v1155_v43 }
 0x15c   : > { %v1472_v41 = vpop.permute.xlu0 %1471 }
 0x15d   : > { %v1157_v58 = vpop.permute.xlu1 %1156  ;;  %v1736_v59 = vsel %vm1712_vm2, %v1703_v57, %v1472_v41 }
 0x15e   : > { %2553 = vmatmul.mubr.msk.bf16.gmra.mrb[20].mxu0 %vm1772_vm3, %v1736_v59  ;;  %v1509_v14 = vsel %vm1481_vm11, %v3213_v1, %v1157_v58 }
 0x160   : > { %v1236_v56 = vpop.permute.xlu0 %1235 }
 0x161   : > { %v1238_v29 = vpop.permute.xlu1 %1237  ;;  %v1540_v8 = vsel %vm1514_vm12, %v1507_v7, %v1236_v56 }
 0x162   : > { %v1542_v15 = vsel %vm1514_vm12, %v1509_v14, %v1238_v29 }
 0x164   : > { %v1273_v61 = vpop.permute.xlu0 %1272 }
 0x165   : > { %v1275_v62 = vpop.permute.xlu1 %1274  ;;  %v1573_v10 = vsel %vm1547_vm13, %v1540_v8, %v1273_v61 }
 0x166   : > { %v1575_v18 = vsel %vm1547_vm13, %v1542_v15, %v1275_v62 }
 0x168   : > { %v1320_v63 = vpop.permute.xlu0 %1319 }
 0x169   : > { %v1322_v26 = vpop.permute.xlu1 %1321  ;;  %v1606_v13 = vsel %vm1580_vm14, %v1573_v10, %v1320_v63 }
 0x16a   : > { %v1608_v12 = vsel %vm1580_vm14, %v1575_v18, %v1322_v26 }
 0x16c   : > { %v1355_v0 = vpop.permute.xlu0 %1354 }
 0x16d   : > { %v1357_v4 = vpop.permute.xlu1 %1356  ;;  %v1639_v9 = vsel %vm1613_vm15, %v1606_v13, %v1355_v0 }
 0x16e   : > { %v1641_v20 = vsel %vm1613_vm15, %v1608_v12, %v1357_v4 }
 0x170   : > { %v1392_v60 = vpop.permute.xlu0 %1391 }
 0x171   : > { %v1394_v49 = vpop.permute.xlu1 %1393  ;;  %v1672_v17 = vsel %vm1646_vm0, %v1639_v9, %v1392_v60 }
 0x172   : > { %v1674_v1 = vsel %vm1646_vm0, %v1641_v20, %v1394_v49 }
 0x174   : > { %v1439_v11 = vpop.permute.xlu0 %1438 }
 0x175   : > { %v1441_v28 = vpop.permute.xlu1 %1440  ;;  %v1705_v50 = vsel %vm1679_vm1, %v1672_v17, %v1439_v11 }
 0x176   : > { %v1707_v48 = vsel %vm1679_vm1, %v1674_v1, %v1441_v28 }
 0x178   : > { %v1474_v19 = vpop.permute.xlu0 %1473 }
 0x179   : > { %v1159_v30 = vpop.permute.xlu1 %1158  ;;  %v1738_v36 = vsel %vm1712_vm2, %v1705_v50, %v1474_v19 }
 0x17a   : > { %2556 = vmatprep.mubr.msk.bf16.mxu0 %vm1772_vm3, %v1738_v36  ;;  %v1511_v54 = vsel %vm1481_vm11, %v3254_v53, %v1159_v30 }
 0x17c   : > { %v1476_v21 = vpop.permute.xlu0 %1475 }
 0x17d   : > { %v1161_v23 = vpop.permute.xlu1 %1160  ;;  %v1740_v22 = vsel %vm1712_vm2, %v1707_v48, %v1476_v21 }
 0x17e   : > { %2557 = vmatmul.mubr.msk.bf16.gmra.mrb[24].mxu0 %vm1772_vm3, %v1740_v22  ;;  %v1513_v35 = vsel %vm1481_vm11, %v3265_v6, %v1161_v23 }
 0x180   : > { %v1240_v16 = vpop.permute.xlu0 %1239 }
 0x181   : > { %v1242_v25 = vpop.permute.xlu1 %1241  ;;  %v1544_v39 = vsel %vm1514_vm12, %v1511_v54, %v1240_v16 }
 0x182   : > { %v1546_v2 = vsel %vm1514_vm12, %v1513_v35, %v1242_v25 }
 0x184   : > { %v1277_v27 = vpop.permute.xlu0 %1276 }
 0x185   : > { %v1279_v46 = vpop.permute.xlu1 %1278  ;;  %v1577_v52 = vsel %vm1547_vm13, %v1544_v39, %v1277_v27 }
 0x186   : > { %v1579_v44 = vsel %vm1547_vm13, %v1546_v2, %v1279_v46 }
 0x188   : > { %v1324_v33 = vpop.permute.xlu0 %1323 }
 0x189   : > { %v1326_v24 = vpop.permute.xlu1 %1325  ;;  %v1610_v6 = vsel %vm1580_vm14, %v1577_v52, %v1324_v33 }
 0x18a   : > { %v1612_v53 = vsel %vm1580_vm14, %v1579_v44, %v1326_v24 }
 0x18c   : > { %v1359_v3 = vpop.permute.xlu0 %1358 }
 0x18d   : > { %v1361_v31 = vpop.permute.xlu1 %1360  ;;  %v1643_v57 = vsel %vm1613_vm15, %v1610_v6, %v1359_v3 }
 0x18e   : > { %v1645_v56 = vsel %vm1613_vm15, %v1612_v53, %v1361_v31 }
 0x190   : > { %v1396_v34 = vpop.permute.xlu0 %1395 }
 0x191   : > { %v1398_v37 = vpop.permute.xlu1 %1397  ;;  %v2534_v38 = vpop.f32.mrb[0].mxu0  ;;  %v1676_v62 = vsel %vm1646_vm0, %v1643_v57, %v1396_v34 }
 0x192   : > { %v1852_v40 = vadd.f32 %v2534_v38, %v3427_v32  ;;  %v1843_v42 = vpop.f32.mrb[1].mxu0  ;;  %v1678_v61 = vsel %vm1646_vm0, %v1645_v56, %v1398_v37 }
 0x193   : > { %v1844_v45 = vadd.f32 %v3427_v32, %v1843_v42  ;;  %v2535_v47 = vpop.f32.mrb[2].mxu0 }
 0x194   : > { %v2004_v43 = vmul.f32 0.2, %v1852_v40  ;;  %v1855_v51 = vadd.f32 %v2535_v47, %v3427_v32  ;;  %v1846_v55 = vpop.f32.mrb[3].mxu0  ;;  %v1443_v5 = vpop.permute.xlu0 %1442  ;;  %vm1972_vm4 = vcmp.gt.f32.partialorder %v1852_v40, 0.0 }
 0x195   : > { %v2002_v41 = vmul.f32 0.2, %v1844_v45  ;;  %v1445_v58 = vpop.permute.xlu1 %1444  ;;  %v1847_v59 = vadd.f32 %v3427_v32, %v1846_v55  ;;  %vm1970_vm6 = vcmp.gt.f32.partialorder %v1844_v45, 0.0  ;;  %v1709_v60 = vsel %vm1679_vm1, %v1676_v62, %v1443_v5 }
 0x196   : > { %vm1973_vm5 = vcmp.gt.f32.partialorder %v1855_v51, 0.0  ;;  %v2005_v29 = vmul.f32 0.2, %v1855_v51  ;;  %v2036_v26 = vsel %vm1972_vm4, %v1852_v40, %v2004_v43  ;;  %v1711_v4 = vsel %vm1679_vm1, %v1678_v61, %v1445_v58 }
 0x197   : > { %v2003_v63 = vmul.f32 0.2, %v1847_v59  ;;  %vm1971_vm7 = vcmp.gt.f32.partialorder %v1847_v59, 0.0  ;;  %v2034_v11 = vsel %vm1970_vm6, %v1844_v45, %v2002_v41 }
 0x198   : > { %v2037_v0 = vsel %vm1973_vm5, %v1855_v51, %v2005_v29  ;;  %v1478_v49 = vpop.permute.xlu0 %1477 }
 0x199   : > { %v2067_v7 = vpack.c.bf16 %v2037_v0, %v2036_v26  ;;  %v1480_v8 = vpop.permute.xlu1 %1479  ;;  %v1742_v10 = vsel %vm1712_vm2, %v1709_v60, %v1478_v49  ;;  %v2035_v13 = vsel %vm1971_vm7, %v1847_v59, %v2003_v63 }
 0x19a   : > { %v1744_v28 = vsel %vm1712_vm2, %v1711_v4, %v1480_v8  ;;  %2560 = vmatprep.mubr.msk.bf16.mxu0 %vm1772_vm3, %v1742_v10  ;;  %v2066_v14 = vpack.c.bf16 %v2035_v13, %v2034_v11 }
 0x19b   : > { %2561 = vmatmul.mubr.msk.bf16.gmra.mrb[28].mxu0 %vm1772_vm3, %v1744_v28 }
 0x19c   : > { %2568 = vmatprep.mubr.msk.bf16.mxu1 %vm1712_vm2, %v2066_v14 }
 0x19d   : > { %2569 = vmatmul.mubr.msk.bf16.vlgmr.msra.gmra.mrb[0].mxu1 %vm1712_vm2, %v2067_v7 }
 0x1b1   : > { %v2538_v9 = vpop.f32.mrb[4].mxu0 }
 0x1b2   : > { %v1868_v15 = vadd.f32 %v2538_v9, %v3427_v32  ;;  %v1859_v17 = vpop.f32.mrb[5].mxu0 }
 0x1b3   : > { %v1860_v18 = vadd.f32 %v3427_v32, %v1859_v17  ;;  %v2539_v50 = vpop.f32.mrb[6].mxu0 }
 0x1b4   : > { %v2008_v19 = vmul.f32 0.2, %v1868_v15  ;;  %v1871_v12 = vadd.f32 %v2539_v50, %v3427_v32  ;;  %v1862_v30 = vpop.f32.mrb[7].mxu0  ;;  %vm1976_vm8 = vcmp.gt.f32.partialorder %v1868_v15, 0.0 }
 0x1b5   : > { %v2006_v36 = vmul.f32 0.2, %v1860_v18  ;;  %v1863_v20 = vadd.f32 %v3427_v32, %v1862_v30  ;;  %vm1974_vm9 = vcmp.gt.f32.partialorder %v1860_v18, 0.0 }
 0x1b6   : > { %vm1977_vm10 = vcmp.gt.f32.partialorder %v1871_v12, 0.0  ;;  %v2009_v1 = vmul.f32 0.2, %v1871_v12  ;;  %v2040_v21 = vsel %vm1976_vm8, %v1868_v15, %v2008_v19 }
 0x1b7   : > { %vm1975_vm11 = vcmp.gt.f32.partialorder %v1863_v20, 0.0  ;;  %v2007_v48 = vmul.f32 0.2, %v1863_v20  ;;  %v2038_v22 = vsel %vm1974_vm9, %v1860_v18, %v2006_v36 }
 0x1b8   : > { %v2041_v23 = vsel %vm1977_vm10, %v1871_v12, %v2009_v1 }
 0x1b9   : > { %v2069_v16 = vpack.c.bf16 %v2041_v23, %v2040_v21  ;;  %v2039_v25 = vsel %vm1975_vm11, %v1863_v20, %v2007_v48 }
 0x1ba   : > { %v2068_v27 = vpack.c.bf16 %v2039_v25, %v2038_v22 }
 0x1bc   : > { %2572 = vmatprep.mubr.msk.bf16.mxu1 %vm1712_vm2, %v2068_v27 }
 0x1bd   : > { %2573 = vmatmul.mubr.msk.bf16.gmra.mrb[4].mxu1 %vm1712_vm2, %v2069_v16 }
 0x1d1   : > { %v2542_v46 = vpop.f32.mrb[8].mxu0 }
 0x1d2   : > { %v1884_v33 = vadd.f32 %v2542_v46, %v3427_v32  ;;  %v1875_v24 = vpop.f32.mrb[9].mxu0 }
 0x1d3   : > { %v1876_v3 = vadd.f32 %v3427_v32, %v1875_v24  ;;  %v2543_v31 = vpop.f32.mrb[10].mxu0 }
 0x1d4   : > { %v2012_v34 = vmul.f32 0.2, %v1884_v33  ;;  %v1887_v54 = vadd.f32 %v2543_v31, %v3427_v32  ;;  %v1878_v35 = vpop.f32.mrb[11].mxu0  ;;  %vm1980_vm13 = vcmp.gt.f32.partialorder %v1884_v33, 0.0 }
 0x1d5   : > { %v2010_v37 = vmul.f32 0.2, %v1876_v3  ;;  %v1879_v38 = vadd.f32 %v3427_v32, %v1878_v35  ;;  %vm1978_vm14 = vcmp.gt.f32.partialorder %v1876_v3, 0.0 }
 0x1d6   : > { %vm1981_vm15 = vcmp.gt.f32.partialorder %v1887_v54, 0.0  ;;  %v2013_v2 = vmul.f32 0.2, %v1887_v54  ;;  %v2044_v40 = vsel %vm1980_vm13, %v1884_v33, %v2012_v34 }
 0x1d7   : > { %vm1979_vm0 = vcmp.gt.f32.partialorder %v1879_v38, 0.0  ;;  %v2011_v39 = vmul.f32 0.2, %v1879_v38  ;;  %v2042_v44 = vsel %vm1978_vm14, %v1876_v3, %v2010_v37 }
 0x1d8   : > { %v2045_v42 = vsel %vm1981_vm15, %v1887_v54, %v2013_v2 }
 0x1d9   : > { %v2071_v52 = vpack.c.bf16 %v2045_v42, %v2044_v40  ;;  %v2043_v45 = vsel %vm1979_vm0, %v1879_v38, %v2011_v39 }
 0x1da   : > { %v2070_v47 = vpack.c.bf16 %v2043_v45, %v2042_v44 }
 0x1dc   : > { %2576 = vmatprep.mubr.msk.bf16.mxu1 %vm1712_vm2, %v2070_v47 }
 0x1dd   : > { %2577 = vmatmul.mubr.msk.bf16.gmra.mrb[8].mxu1 %vm1712_vm2, %v2071_v52 }
 0x1f1   : > { %v2546_v53 = vpop.f32.mrb[12].mxu0 }
 0x1f2   : > { %v1900_v6 = vadd.f32 %v2546_v53, %v3427_v32  ;;  %v1891_v43 = vpop.f32.mrb[13].mxu0 }
 0x1f3   : > { %v1892_v51 = vadd.f32 %v3427_v32, %v1891_v43  ;;  %v2547_v55 = vpop.f32.mrb[14].mxu0 }
 0x1f4   : > { %v2016_v5 = vmul.f32 0.2, %v1900_v6  ;;  %v1903_v57 = vadd.f32 %v2547_v55, %v3427_v32  ;;  %v1894_v41 = vpop.f32.mrb[15].mxu0  ;;  %vm1984_vm1 = vcmp.gt.f32.partialorder %v1900_v6, 0.0 }
 0x1f5   : > { %v2014_v58 = vmul.f32 0.2, %v1892_v51  ;;  %v1895_v59 = vadd.f32 %v3427_v32, %v1894_v41  ;;  %vm1982_vm3 = vcmp.gt.f32.partialorder %v1892_v51, 0.0 }
 0x1f6   : > { %vm1985_vm4 = vcmp.gt.f32.partialorder %v1903_v57, 0.0  ;;  %v2017_v56 = vmul.f32 0.2, %v1903_v57  ;;  %v2048_v61 = vsel %vm1984_vm1, %v1900_v6, %v2016_v5 }
 0x1f7   : > { %vm1983_vm5 = vcmp.gt.f32.partialorder %v1895_v59, 0.0  ;;  %v2015_v29 = vmul.f32 0.2, %v1895_v59  ;;  %v2046_v63 = vsel %vm1982_vm3, %v1892_v51, %v2014_v58 }
 0x1f8   : > { %v2049_v62 = vsel %vm1985_vm4, %v1903_v57, %v2017_v56  ;;  %v3495_v56 = vld [vmem:[%s3611_s4] ss:$0 sm:$0xff] }
 0x1f9   : > { %v2073_v26 = vpack.c.bf16 %v2049_v62, %v2048_v61  ;;  %v2047_v0 = vsel %vm1983_vm5, %v1895_v59, %v2015_v29 }
 0x1fa   : > { %v2072_v4 = vpack.c.bf16 %v2047_v0, %v2046_v63 }
 0x1fc   : > { %2580 = vmatprep.mubr.msk.bf16.mxu1 %vm1712_vm2, %v2072_v4 }
 0x1fd   : > { %2581 = vmatmul.mubr.msk.bf16.gmra.mrb[12].mxu1 %vm1712_vm2, %v2073_v26 }
 0x211   : > { %v2550_v60 = vpop.f32.mrb[16].mxu0 }
 0x212   : > { %v1916_v49 = vadd.f32 %v2550_v60, %v3427_v32  ;;  %v1907_v7 = vpop.f32.mrb[17].mxu0 }
 0x213   : > { %v1908_v8 = vadd.f32 %v3427_v32, %v1907_v7  ;;  %v2551_v10 = vpop.f32.mrb[18].mxu0 }
 0x214   : > { %v2020_v11 = vmul.f32 0.2, %v1916_v49  ;;  %v1919_v13 = vadd.f32 %v2551_v10, %v3427_v32  ;;  %v1910_v28 = vpop.f32.mrb[19].mxu0  ;;  %vm1988_vm6 = vcmp.gt.f32.partialorder %v1916_v49, 0.0 }
 0x215   : > { %v2018_v14 = vmul.f32 0.2, %v1908_v8  ;;  %v1911_v9 = vadd.f32 %v3427_v32, %v1910_v28  ;;  %vm1986_vm7 = vcmp.gt.f32.partialorder %v1908_v8, 0.0 }
 0x216   : > { %vm1989_vm8 = vcmp.gt.f32.partialorder %v1919_v13, 0.0  ;;  %v2021_v15 = vmul.f32 0.2, %v1919_v13  ;;  %v2052_v18 = vsel %vm1988_vm6, %v1916_v49, %v2020_v11 }
 0x217   : > { %vm1987_vm9 = vcmp.gt.f32.partialorder %v1911_v9, 0.0  ;;  %v2019_v17 = vmul.f32 0.2, %v1911_v9  ;;  %v2050_v19 = vsel %vm1986_vm7, %v1908_v8, %v2018_v14 }
 0x218   : > { %v2053_v50 = vsel %vm1989_vm8, %v1919_v13, %v2021_v15 }
 0x219   : > { %v2075_v12 = vpack.c.bf16 %v2053_v50, %v2052_v18  ;;  %v2051_v30 = vsel %vm1987_vm9, %v1911_v9, %v2019_v17 }
 0x21a   : > { %v2074_v36 = vpack.c.bf16 %v2051_v30, %v2050_v19 }
 0x21c   : > { %2584 = vmatprep.mubr.msk.bf16.mxu1 %vm1712_vm2, %v2074_v36 }
 0x21d   : > { %2585 = vmatmul.mubr.msk.bf16.gmra.mrb[16].mxu1 %vm1712_vm2, %v2075_v12 }
 0x231   : > { %v2554_v20 = vpop.f32.mrb[20].mxu0 }
 0x232   : > { %v1932_v1 = vadd.f32 %v2554_v20, %v3427_v32  ;;  %v1923_v48 = vpop.f32.mrb[21].mxu0 }
 0x233   : > { %v1924_v21 = vadd.f32 %v3427_v32, %v1923_v48  ;;  %v2555_v23 = vpop.f32.mrb[22].mxu0 }
 0x234   : > { %v2024_v22 = vmul.f32 0.2, %v1932_v1  ;;  %v1935_v16 = vadd.f32 %v2555_v23, %v3427_v32  ;;  %v1926_v25 = vpop.f32.mrb[23].mxu0  ;;  %vm1992_vm10 = vcmp.gt.f32.partialorder %v1932_v1, 0.0 }
 0x235   : > { %v2022_v27 = vmul.f32 0.2, %v1924_v21  ;;  %v1927_v46 = vadd.f32 %v3427_v32, %v1926_v25  ;;  %vm1990_vm11 = vcmp.gt.f32.partialorder %v1924_v21, 0.0 }
 0x236   : > { %vm1993_vm13 = vcmp.gt.f32.partialorder %v1935_v16, 0.0  ;;  %v2025_v33 = vmul.f32 0.2, %v1935_v16  ;;  %v2056_v3 = vsel %vm1992_vm10, %v1932_v1, %v2024_v22 }
 0x237   : > { %vm1991_vm14 = vcmp.gt.f32.partialorder %v1927_v46, 0.0  ;;  %v2023_v24 = vmul.f32 0.2, %v1927_v46  ;;  %v2054_v34 = vsel %vm1990_vm11, %v1924_v21, %v2022_v27 }
 0x238   : > { %v2057_v31 = vsel %vm1993_vm13, %v1935_v16, %v2025_v33 }
 0x239   : > { %v2077_v54 = vpack.c.bf16 %v2057_v31, %v2056_v3  ;;  %v2055_v35 = vsel %vm1991_vm14, %v1927_v46, %v2023_v24 }
 0x23a   : > { %v2076_v37 = vpack.c.bf16 %v2055_v35, %v2054_v34 }
 0x23c   : > { %2588 = vmatprep.mubr.msk.bf16.mxu1 %vm1712_vm2, %v2076_v37 }
 0x23d   : > { %2589 = vmatmul.mubr.msk.bf16.gmra.mrb[20].mxu1 %vm1712_vm2, %v2077_v54 }
 0x251   : > { %v2558_v38 = vpop.f32.mrb[24].mxu0 }
 0x252   : > { %v1948_v2 = vadd.f32 %v2558_v38, %v3427_v32  ;;  %v1939_v39 = vpop.f32.mrb[25].mxu0 }
 0x253   : > { %v1940_v40 = vadd.f32 %v3427_v32, %v1939_v39  ;;  %v2559_v42 = vpop.f32.mrb[26].mxu0 }
 0x254   : > { %v2028_v44 = vmul.f32 0.2, %v1948_v2  ;;  %v1951_v52 = vadd.f32 %v2559_v42, %v3427_v32  ;;  %v1942_v45 = vpop.f32.mrb[27].mxu0  ;;  %vm1996_vm15 = vcmp.gt.f32.partialorder %v1948_v2, 0.0 }
 0x255   : > { %v2026_v47 = vmul.f32 0.2, %v1940_v40  ;;  %v1943_v53 = vadd.f32 %v3427_v32, %v1942_v45  ;;  %vm1994_vm0 = vcmp.gt.f32.partialorder %v1940_v40, 0.0 }
 0x256   : > { %vm1997_vm1 = vcmp.gt.f32.partialorder %v1951_v52, 0.0  ;;  %v2029_v6 = vmul.f32 0.2, %v1951_v52  ;;  %v2060_v51 = vsel %vm1996_vm15, %v1948_v2, %v2028_v44 }
 0x257   : > { %vm1995_vm3 = vcmp.gt.f32.partialorder %v1943_v53, 0.0  ;;  %v2027_v43 = vmul.f32 0.2, %v1943_v53  ;;  %v2058_v5 = vsel %vm1994_vm0, %v1940_v40, %v2026_v47 }
 0x258   : > { %v2061_v55 = vsel %vm1997_vm1, %v1951_v52, %v2029_v6 }
 0x259   : > { %v2079_v57 = vpack.c.bf16 %v2061_v55, %v2060_v51  ;;  %v2059_v41 = vsel %vm1995_vm3, %v1943_v53, %v2027_v43 }
 0x25a   : > { %v2078_v58 = vpack.c.bf16 %v2059_v41, %v2058_v5 }
 0x25c   : > { %2592 = vmatprep.mubr.msk.bf16.mxu1 %vm1712_vm2, %v2078_v58 }
 0x25d   : > { %2593 = vmatmul.mubr.msk.bf16.gmra.mrb[24].mxu1 %vm1712_vm2, %v2079_v57 }
 0x26e   : > { %v2562_v59 = vpop.f32.mrb[28].mxu0 }
 0x26f   : > { %v1964_v29 = vadd.f32 %v2562_v59, %v3427_v32  ;;  %v1955_v61 = vpop.f32.mrb[29].mxu0 }
 0x270   : > { %v1956_v62 = vadd.f32 %v3427_v32, %v1955_v61  ;;  %v2563_v63 = vpop.f32.mrb[30].mxu0  ;;  %v2570_v26 = vpop.f32.mrb[0].mxu1 }
 0x271   : > { %v2032_v0 = vmul.f32 0.2, %v1964_v29  ;;  %v1967_v4 = vadd.f32 %v2563_v63, %v3427_v32  ;;  %v2196_v60 = vadd.f32 %v2570_v26, %v3495_v56  ;;  %v1958_v49 = vpop.f32.mrb[31].mxu0  ;;  %v2187_v7 = vpop.f32.mrb[1].mxu1  ;;  %vm2000_vm4 = vcmp.gt.f32.partialorder %v1964_v29, 0.0 }
 0x272   : > { %v2030_v8 = vmul.f32 0.2, %v1956_v62  ;;  %v1959_v10 = vadd.f32 %v3427_v32, %v1958_v49  ;;  %v2188_v11 = vadd.f32 %v3495_v56, %v2187_v7  ;;  %v2571_v13 = vpop.f32.mrb[2].mxu1  ;;  %vm1998_vm5 = vcmp.gt.f32.partialorder %v1956_v62, 0.0 }
 0x273   : > { %vm2001_vm6 = vcmp.gt.f32.partialorder %v1967_v4, 0.0  ;;  %v2033_v28 = vmul.f32 0.2, %v1967_v4  ;;  %2316 = vst.msk [vmem:[%s3502_s26 + $0x10] sm:$0xff] %vm1514_vm12, %v2196_v60  ;;  %v2199_v14 = vadd.f32 %v2571_v13, %v3495_v56  ;;  %v2190_v9 = vpop.f32.mrb[3].mxu1  ;;  %v2064_v32 = vsel %vm2000_vm4, %v1964_v29, %v2032_v0 }
 0x274   : > { %vm1999_vm7 = vcmp.gt.f32.partialorder %v1959_v10, 0.0  ;;  %v2031_v15 = vmul.f32 0.2, %v1959_v10  ;;  %2314 = vst.msk [vmem:[%s3502_s26] sm:$0xff] %vm1514_vm12, %v2188_v11  ;;  %v2191_v17 = vadd.f32 %v3495_v56, %v2190_v9  ;;  %v2062_v50 = vsel %vm1998_vm5, %v1956_v62, %v2030_v8 }
 0x275   : > { %v2065_v18 = vsel %vm2001_vm6, %v1967_v4, %v2033_v28  ;;  %2317 = vst.msk [vmem:[%s3502_s26 + $0x18] sm:$0xff] %vm1514_vm12, %v2199_v14 }
 0x276   : > { %v2081_v19 = vpack.c.bf16 %v2065_v18, %v2064_v32  ;;  %v2063_v12 = vsel %vm1999_vm7, %v1959_v10, %v2031_v15  ;;  %2315 = vst.msk [vmem:[%s3502_s26 + $0x8] sm:$0xff] %vm1514_vm12, %v2191_v17 }
 0x277   : > { %v2080_v30 = vpack.c.bf16 %v2063_v12, %v2062_v50 }
 0x279   : > { %2596 = vmatprep.mubr.msk.bf16.mxu1 %vm1712_vm2, %v2080_v30 }
 0x27a   : > { %2597 = vmatmul.mubr.msk.bf16.gmra.mrb[28].mxu1 %vm1712_vm2, %v2081_v19 }
 0x290   : > { %v2574_v36 = vpop.f32.mrb[4].mxu1 }
 0x291   : > { %v2212_v20 = vadd.f32 %v2574_v36, %v3495_v56  ;;  %v2203_v1 = vpop.f32.mrb[5].mxu1 }
 0x292   : > { %v2204_v48 = vadd.f32 %v3495_v56, %v2203_v1  ;;  %v2575_v21 = vpop.f32.mrb[6].mxu1 }
 0x293   : > { %2320 = vst.msk [vmem:[%s3502_s26 + $0x30] sm:$0xff] %vm1514_vm12, %v2212_v20  ;;  %v2215_v23 = vadd.f32 %v2575_v21, %v3495_v56  ;;  %v2206_v22 = vpop.f32.mrb[7].mxu1 }
 0x294   : > { %2318 = vst.msk [vmem:[%s3502_s26 + $0x20] sm:$0xff] %vm1514_vm12, %v2204_v48  ;;  %v2207_v16 = vadd.f32 %v3495_v56, %v2206_v22 }
 0x295   : > { %2321 = vst.msk [vmem:[%s3502_s26 + $0x38] sm:$0xff] %vm1514_vm12, %v2215_v23 }
 0x296   : > { %2319 = vst.msk [vmem:[%s3502_s26 + $0x28] sm:$0xff] %vm1514_vm12, %v2207_v16 }
 0x2b0   : > { %v2578_v25 = vpop.f32.mrb[8].mxu1 }
 0x2b1   : > { %v2228_v27 = vadd.f32 %v2578_v25, %v3495_v56  ;;  %v2219_v46 = vpop.f32.mrb[9].mxu1 }
 0x2b2   : > { %v2220_v33 = vadd.f32 %v3495_v56, %v2219_v46  ;;  %v2579_v24 = vpop.f32.mrb[10].mxu1 }
 0x2b3   : > { %2324 = vst.msk [vmem:[%s3502_s26 + $0x50] sm:$0xff] %vm1514_vm12, %v2228_v27  ;;  %v2231_v3 = vadd.f32 %v2579_v24, %v3495_v56  ;;  %v2222_v31 = vpop.f32.mrb[11].mxu1 }
 0x2b4   : > { %2322 = vst.msk [vmem:[%s3502_s26 + $0x40] sm:$0xff] %vm1514_vm12, %v2220_v33  ;;  %v2223_v34 = vadd.f32 %v3495_v56, %v2222_v31 }
 0x2b5   : > { %2325 = vst.msk [vmem:[%s3502_s26 + $0x58] sm:$0xff] %vm1514_vm12, %v2231_v3 }
 0x2b6   : > { %2323 = vst.msk [vmem:[%s3502_s26 + $0x48] sm:$0xff] %vm1514_vm12, %v2223_v34 }
 0x2d0   : > { %v2582_v54 = vpop.f32.mrb[12].mxu1 }
 0x2d1   : > { %v2244_v35 = vadd.f32 %v2582_v54, %v3495_v56  ;;  %v2235_v37 = vpop.f32.mrb[13].mxu1 }
 0x2d2   : > { %v2236_v38 = vadd.f32 %v3495_v56, %v2235_v37  ;;  %v2583_v2 = vpop.f32.mrb[14].mxu1 }
 0x2d3   : > { %2328 = vst.msk [vmem:[%s3502_s26 + $0x70] sm:$0xff] %vm1514_vm12, %v2244_v35  ;;  %v2247_v39 = vadd.f32 %v2583_v2, %v3495_v56  ;;  %v2238_v40 = vpop.f32.mrb[15].mxu1 }
 0x2d4   : > { %2326 = vst.msk [vmem:[%s3502_s26 + $0x60] sm:$0xff] %vm1514_vm12, %v2236_v38  ;;  %v2239_v42 = vadd.f32 %v3495_v56, %v2238_v40 }
 0x2d5   : > { %2329 = vst.msk [vmem:[%s3502_s26 + $0x78] sm:$0xff] %vm1514_vm12, %v2247_v39 }
 0x2d6   : > { %2327 = vst.msk [vmem:[%s3502_s26 + $0x68] sm:$0xff] %vm1514_vm12, %v2239_v42 }
 0x2f0   : > { %v2586_v44 = vpop.f32.mrb[16].mxu1 }
 0x2f1   : > { %v2260_v52 = vadd.f32 %v2586_v44, %v3495_v56  ;;  %v2251_v45 = vpop.f32.mrb[17].mxu1 }
 0x2f2   : > { %v2252_v47 = vadd.f32 %v3495_v56, %v2251_v45  ;;  %v2587_v53 = vpop.f32.mrb[18].mxu1 }
 0x2f3   : > { %2332 = vst.msk [vmem:[%s3502_s26 + $0x90] sm:$0xff] %vm1514_vm12, %v2260_v52  ;;  %v2263_v6 = vadd.f32 %v2587_v53, %v3495_v56  ;;  %v2254_v43 = vpop.f32.mrb[19].mxu1 }
 0x2f4   : > { %2330 = vst.msk [vmem:[%s3502_s26 + $0x80] sm:$0xff] %vm1514_vm12, %v2252_v47  ;;  %v2255_v51 = vadd.f32 %v3495_v56, %v2254_v43 }
 0x2f5   : > { %2333 = vst.msk [vmem:[%s3502_s26 + $0x98] sm:$0xff] %vm1514_vm12, %v2263_v6 }
 0x2f6   : > { %2331 = vst.msk [vmem:[%s3502_s26 + $0x88] sm:$0xff] %vm1514_vm12, %v2255_v51 }
 0x310   : > { %v2590_v55 = vpop.f32.mrb[20].mxu1 }
 0x311   : > { %v2276_v5 = vadd.f32 %v2590_v55, %v3495_v56  ;;  %v2267_v57 = vpop.f32.mrb[21].mxu1 }
 0x312   : > { %v2268_v41 = vadd.f32 %v3495_v56, %v2267_v57  ;;  %v2591_v58 = vpop.f32.mrb[22].mxu1 }
 0x313   : > { %2336 = vst.msk [vmem:[%s3502_s26 + $0xb0] sm:$0xff] %vm1514_vm12, %v2276_v5  ;;  %v2279_v59 = vadd.f32 %v2591_v58, %v3495_v56  ;;  %v2270_v29 = vpop.f32.mrb[23].mxu1 }
 0x314   : > { %2334 = vst.msk [vmem:[%s3502_s26 + $0xa0] sm:$0xff] %vm1514_vm12, %v2268_v41  ;;  %v2271_v61 = vadd.f32 %v3495_v56, %v2270_v29 }
 0x315   : > { %2337 = vst.msk [vmem:[%s3502_s26 + $0xb8] sm:$0xff] %vm1514_vm12, %v2279_v59 }
 0x316   : > { %2335 = vst.msk [vmem:[%s3502_s26 + $0xa8] sm:$0xff] %vm1514_vm12, %v2271_v61 }
 0x330   : > { %v2594_v62 = vpop.f32.mrb[24].mxu1 }
 0x331   : > { %v2292_v63 = vadd.f32 %v2594_v62, %v3495_v56  ;;  %v2283_v26 = vpop.f32.mrb[25].mxu1 }
 0x332   : > { %v2284_v0 = vadd.f32 %v3495_v56, %v2283_v26  ;;  %v2595_v4 = vpop.f32.mrb[26].mxu1 }
 0x333   : > { %2340 = vst.msk [vmem:[%s3502_s26 + $0xd0] sm:$0xff] %vm1514_vm12, %v2292_v63  ;;  %v2295_v60 = vadd.f32 %v2595_v4, %v3495_v56  ;;  %v2286_v49 = vpop.f32.mrb[27].mxu1 }
 0x334   : > { %2338 = vst.msk [vmem:[%s3502_s26 + $0xc0] sm:$0xff] %vm1514_vm12, %v2284_v0  ;;  %v2287_v7 = vadd.f32 %v3495_v56, %v2286_v49 }
 0x335   : > { %2341 = vst.msk [vmem:[%s3502_s26 + $0xd8] sm:$0xff] %vm1514_vm12, %v2295_v60 }
 0x336   : > { %2339 = vst.msk [vmem:[%s3502_s26 + $0xc8] sm:$0xff] %vm1514_vm12, %v2287_v7 }
 0x34d   : > { %v2598_v8 = vpop.f32.mrb[28].mxu1 }
 0x34e   : > { %v2308_v10 = vadd.f32 %v2598_v8, %v3495_v56  ;;  %v2299_v11 = vpop.f32.mrb[29].mxu1 }
 0x34f   : > { %v2300_v13 = vadd.f32 %v3495_v56, %v2299_v11  ;;  %v2599_v28 = vpop.f32.mrb[30].mxu1 }
 0x350   : > { %2344 = vst.msk [vmem:[%s3502_s26 + $0xf0] sm:$0xff] %vm1514_vm12, %v2308_v10  ;;  %v2311_v14 = vadd.f32 %v2599_v28, %v3495_v56  ;;  %v2302_v9 = vpop.f32.mrb[31].mxu1 }
 0x351   : > { %2342 = vst.msk [vmem:[%s3502_s26 + $0xe0] sm:$0xff] %vm1514_vm12, %v2300_v13  ;;  %v2303_v15 = vadd.f32 %v3495_v56, %v2302_v9 }
 0x352   : > { %2345 = vst.msk [vmem:[%s3502_s26 + $0xf8] sm:$0xff] %vm1514_vm12, %v2311_v14 }
 0x353   : > { %2343 = vst.msk [vmem:[%s3502_s26 + $0xe8] sm:$0xff] %vm1514_vm12, %v2303_v15 }
 0x354 PF: > { %s15_s18 = sadd.s32 1, %s2669_s18  }
 0x355   : > { %p12_p4 = scmp.ge.s32.totalorder %s15_s18, 4  }
 0x357   :  { %14 = sbr.rel (!%p12_p4) target bundleno = 1 (0x1), region = 71 }

</bundles_post_ra>
